<compile_context>
chip_gen: v7x
topology: tpu7x:2x2x1
jax: 0.10.0
libtpu: 0.0.40
codegen_flags: <defaults>
</compile_context>

<pallas_src>
import functools

import jax
import jax.numpy as jnp
from jax.experimental import pallas as pl
from jax.experimental.pallas import tpu as pltpu


VMEM_LIMIT_BYTES = 32 * 1024 * 1024  # safe on v5e/v6e (128 MiB) and v7x (64 MiB)


def _round_up(n, m):
    return ((n + m - 1) // m) * m


def _pick_tile(total, max_tile, granule):
    """Largest multiple of `granule` that is <= max_tile and divides `total`.

    `total` must already be a multiple of `granule`, so this always terminates
    (worst case returns `granule`). Avoids wasting padding beyond alignment."""
    t = min(max_tile, total)
    t = max((t // granule) * granule, granule)
    while total % t != 0:
        t -= granule
    return t


# ----------------------------------------------------------------------------
# Pallas kernels
# ----------------------------------------------------------------------------
def _conv_mm_kernel(w_ref, p_ref, b_ref, o_ref):
    # w: (C_out, K_pad)  p: (K_pad, TM)  b: (C_out, 1)  o: (C_out, TM)
    y = jnp.dot(w_ref[...], p_ref[...], preferred_element_type=jnp.float32)
    o_ref[...] = jnp.maximum(y + b_ref[...], 0.0).astype(o_ref.dtype)


def _mlp_kernel(x_ref, w1_ref, b1_ref, w2_ref, b2_ref, o_ref):
    # x: (TB, feat)  w1: (feat, 512)  b1: (1, 512)  w2: (512, A_pad)  b2: (1, A_pad)
    h = jnp.dot(x_ref[...], w1_ref[...], preferred_element_type=jnp.float32)
    h = jnp.maximum(h + b1_ref[...], 0.0)
    y = jnp.dot(h, w2_ref[...], preferred_element_type=jnp.float32) + b2_ref[...]
    o_ref[...] = y.astype(o_ref.dtype)


# ----------------------------------------------------------------------------
# Conv2d (valid padding) in channel-major layout via im2col + transposed matmul
# ----------------------------------------------------------------------------
def _im2col_t(x, kh, kw, stride):
    """x: (C, B, H, W) -> patches.T of shape (C*KH*KW, B*OH*OW).

    Row index ordering is (c, kh, kw), matching torch weight.reshape(C_out, -1);
    column ordering is (b, oh, ow). Pure slicing + reshape (no transpose)."""
    C, B, H, W = x.shape
    oh = (H - kh) // stride + 1
    ow = (W - kw) // stride + 1
    cols = []
    for i in range(kh):
        for j in range(kw):
            cols.append(x[:, :, i:i + stride * oh:stride, j:j + stride * ow:stride])
    p = jnp.stack(cols, axis=1)               # (C, KH*KW, B, OH, OW)
    p = p.reshape(C * kh * kw, B * oh * ow)   # (K, M)
    return p, oh, ow


def conv2d_relu_t(act, w, b, *, kh, kw, stride, max_tm=1024):
    """act: (C_in, B, H, W); w: (C_out, K_pad) pre-reshaped/padded; b: (C_out, 1).

    Returns ReLU(conv(act)) in channel-major layout (C_out, B, OH, OW)."""
    c_in, bsz, _, _ = act.shape
    c_out, k_pad = w.shape
    k = c_in * kh * kw

    patches, oh, ow = _im2col_t(act, kh, kw, stride)     # (K, M)
    m = bsz * oh * ow
    m_pad = _round_up(m, 128)
    tm = _pick_tile(m_pad, max_tm, 128)
    patches = jnp.pad(patches, ((0, k_pad - k), (0, m_pad - m)))

    out = pl.pallas_call(
        _conv_mm_kernel,
        out_shape=jax.ShapeDtypeStruct((c_out, m_pad), jnp.float32),
        grid=(m_pad // tm,),
        in_specs=[
            pl.BlockSpec((c_out, k_pad), lambda i: (0, 0)),   # weight, resident in VMEM
            pl.BlockSpec((k_pad, tm), lambda i: (0, i)),      # streamed patch tile
            pl.BlockSpec((c_out, 1), lambda i: (0, 0)),       # bias, resident
        ],
        out_specs=pl.BlockSpec((c_out, tm), lambda i: (0, i)),  # lane-dense output
        compiler_params=pltpu.CompilerParams(
            dimension_semantics=("parallel",),
            vmem_limit_bytes=VMEM_LIMIT_BYTES),
    )(w, patches, b)

    out = out[:, :m]
    return out.reshape(c_out, bsz, oh, ow)


# ----------------------------------------------------------------------------
# Fused Linear(feat,512)+ReLU+Linear(512,action) (action dim padded to 128)
# ----------------------------------------------------------------------------
def fused_mlp(x, w1, b1, w2, b2, *, max_tb=256):
    """x: (B, feat); w1: (feat, 512); b1: (1, 512); w2: (512, A_pad); b2: (1, A_pad)."""
    bsz, feat = x.shape
    hid = w1.shape[1]
    a_pad = w2.shape[1]

    b_pad = _round_up(bsz, 8)
    tb = _pick_tile(b_pad, max_tb, 8)
    x = jnp.pad(x, ((0, b_pad - bsz), (0, 0)))

    out = pl.pallas_call(
        _mlp_kernel,
        out_shape=jax.ShapeDtypeStruct((b_pad, a_pad), jnp.float32),
        grid=(b_pad // tb,),
        in_specs=[
            pl.BlockSpec((tb, feat), lambda i: (i, 0)),     # streamed activation tile
            pl.BlockSpec((feat, hid), lambda i: (0, 0)),    # fc1 weight, resident
            pl.BlockSpec((1, hid), lambda i: (0, 0)),
            pl.BlockSpec((hid, a_pad), lambda i: (0, 0)),   # fc2 weight, resident
            pl.BlockSpec((1, a_pad), lambda i: (0, 0)),
        ],
        out_specs=pl.BlockSpec((tb, a_pad), lambda i: (i, 0)),
        compiler_params=pltpu.CompilerParams(
            dimension_semantics=("parallel",),
            vmem_limit_bytes=VMEM_LIMIT_BYTES),
    )(x, w1, b1, w2, b2)
    return out[:bsz]


# ----------------------------------------------------------------------------
# Parameter init (torch layout) + one-time preparation into kernel layouts
# ----------------------------------------------------------------------------
def init_params(key, frame, action_size):
    c_in, h, w = frame
    # feature_size() replicated analytically for the valid convs:
    h1 = (h - 8) // 4 + 1
    h2 = (h1 - 4) // 2 + 1
    h3 = (h2 - 3) // 1 + 1
    w1 = (w - 8) // 4 + 1
    w2 = (w1 - 4) // 2 + 1
    w3 = (w2 - 3) // 1 + 1
    feat = 64 * h3 * w3

    ks = jax.random.split(key, 10)

    def init_conv(kw_, kb_, c_out, c_inn, kh, kwd):
        fan_in = c_inn * kh * kwd
        scale = 1.0 / jnp.sqrt(fan_in)
        return (jax.random.normal(kw_, (c_out, c_inn, kh, kwd), jnp.float32) * scale,
                jax.random.normal(kb_, (c_out,), jnp.float32) * scale)

    def init_fc(kw_, kb_, n_out, n_in):
        scale = 1.0 / jnp.sqrt(n_in)
        return (jax.random.normal(kw_, (n_out, n_in), jnp.float32) * scale,  # torch (out, in)
                jax.random.normal(kb_, (n_out,), jnp.float32) * scale)

    params = {
        "conv1": init_conv(ks[0], ks[1], 32, c_in, 8, 8),
        "conv2": init_conv(ks[2], ks[3], 64, 32, 4, 4),
        "conv3": init_conv(ks[4], ks[5], 64, 64, 3, 3),
        "fc1":   init_fc(ks[6], ks[7], 512, feat),
        "fc2":   init_fc(ks[8], ks[9], action_size, 512),
    }
    return params, feat


def prepare_params(torch_params, action_size):
    """One-time (outside jit) reshape / transpose / zero-pad into kernel layouts."""
    prepared = {}
    for name in ("conv1", "conv2", "conv3"):
        w, b = torch_params[name]
        c_out, c_in, kh, kw = w.shape
        k = c_in * kh * kw
        k_pad = _round_up(k, 128)                          # e.g. conv3: 576 -> 640
        w2 = jnp.pad(w.reshape(c_out, k), ((0, 0), (0, k_pad - k)))
        prepared[name + "_w"] = w2                         # (C_out, K_pad)
        prepared[name + "_b"] = b.reshape(c_out, 1)        # (C_out, 1)
    wf1, bf1 = torch_params["fc1"]                         # (512, feat), (512,)
    wf2, bf2 = torch_params["fc2"]                         # (A, 512), (A,)
    a_pad = _round_up(action_size, 128)
    prepared["fc1_w"] = jnp.asarray(wf1).T                 # (feat, 512)
    prepared["fc1_b"] = bf1.reshape(1, -1)                 # (1, 512)
    prepared["fc2_w"] = jnp.pad(jnp.asarray(wf2).T,
                                ((0, 0), (0, a_pad - action_size)))   # (512, A_pad)
    prepared["fc2_b"] = jnp.pad(bf2.reshape(1, -1),
                                ((0, 0), (0, a_pad - action_size)))   # (1, A_pad)
    return prepared


# ----------------------------------------------------------------------------
# Forward pass (semantics of AtariFunctionApproximator.forward)
# ----------------------------------------------------------------------------
def atari_forward(params, x, *, action_size):
    # x: NCHW f32 (B, C, H, W)
    bsz = x.shape[0]
    act = jnp.transpose(x, (1, 0, 2, 3))   # single layout change: NCHW -> CBHW
    act = conv2d_relu_t(act, params["conv1_w"], params["conv1_b"], kh=8, kw=8, stride=4)
    act = conv2d_relu_t(act, params["conv2_w"], params["conv2_b"], kh=4, kw=4, stride=2)
    act = conv2d_relu_t(act, params["conv3_w"], params["conv3_b"], kh=3, kw=3, stride=1)
    # (64, B, H3, W3) -> (B, 64*H3*W3) in torch's (c, h, w) flatten order.
    feats = jnp.transpose(act, (1, 0, 2, 3)).reshape(bsz, -1)
    q = fused_mlp(feats, params["fc1_w"], params["fc1_b"],
                  params["fc2_w"], params["fc2_b"])
    return q[:, :action_size]


# ----------------------------------------------------------------------------
# Pure-JAX reference (for correctness check only)
# ----------------------------------------------------------------------------
def reference_forward(torch_params, x):
    hp = jax.lax.Precision.HIGHEST

    def conv(x, w, b, stride):
        y = jax.lax.conv_general_dilated(
            x, w, window_strides=(stride, stride), padding="VALID",
            dimension_numbers=("NCHW", "OIHW", "NCHW"), precision=hp)
        return jax.nn.relu(y + b.reshape(1, -1, 1, 1))

    w1, b1 = torch_params["conv1"]
    w2, b2 = torch_params["conv2"]
    w3, b3 = torch_params["conv3"]
    x = conv(x, w1, b1, 4)
    x = conv(x, w2, b2, 2)
    x = conv(x, w3, b3, 1)
    x = x.reshape(x.shape[0], -1)
    wf1, bf1 = torch_params["fc1"]
    wf2, bf2 = torch_params["fc2"]
    x = jax.nn.relu(jnp.dot(x, wf1.T, precision=hp) + bf1)
    return jnp.dot(x, wf2.T, precision=hp) + bf2


if __name__ == "__main__":
    # Small, conv-stack-consistent shapes: frame=(4, 36, 36) -> spatial sizes
    # 36 -> 8 -> 3 -> 1, so feature_size = 64.  batch=2, action_size=6.
    frame = (4, 36, 36)
    action_size = 6
    batch = 2

    key = jax.random.PRNGKey(0)
    k_params, k_x = jax.random.split(key)
    torch_params, feat = init_params(k_params, frame, action_size)
    params = prepare_params(torch_params, action_size)

    x = jax.random.normal(k_x, (batch,) + frame, jnp.float32)  # NCHW

    fwd = jax.jit(functools.partial(atari_forward, action_size=action_size))
    q_values = fwd(params, x)
    jax.block_until_ready(q_values)

    assert q_values.shape == (batch, action_size), q_values.shape
    assert q_values.dtype == jnp.float32
    assert bool(jnp.all(jnp.isfinite(q_values)))

    q_ref = reference_forward(torch_params, x)
    max_err = float(jnp.max(jnp.abs(q_values - q_ref)))
    assert max_err < 1e-2, f"mismatch vs reference: max abs err = {max_err}"

    print("KERNEL_OK")
</pallas_src>

<mosaic_0001>
module attributes {stable_mosaic.version = 11 : i64} {
  func.func @_conv_mm_kernel(%arg0: i32, %arg1: memref<32x256xf32, #tpu.memory_space<vmem>>, %arg2: memref<256x128xf32, #tpu.memory_space<vmem>>, %arg3: memref<32x1xf32, #tpu.memory_space<vmem>>, %arg4: memref<32x128xf32, #tpu.memory_space<vmem>>) attributes {dimension_semantics = [#tpu.dimension_semantics<parallel>], iteration_bounds = array<i64: 1>, scalar_prefetch = 0 : i64, scratch_operands = 0 : i64, tpu.core_type = #tpu.core_type<tc>, window_params = [{pipeline_mode = #tpu.pipeline_mode<synchronous>, transform_indices = @transform_0, window_bounds = array<i64: 32, 256>}, {transform_indices = @transform_1, window_bounds = array<i64: 256, 128>}, {pipeline_mode = #tpu.pipeline_mode<synchronous>, transform_indices = @transform_2, window_bounds = array<i64: 32, 1>}, {transform_indices = @transform_3, window_bounds = array<i64: 32, 128>}]} {
    %c0 = arith.constant 0 : index
    %c0_0 = arith.constant 0 : index
    %0 = vector.load %arg1[%c0, %c0_0] : memref<32x256xf32, #tpu.memory_space<vmem>>, vector<32x256xf32>
    %c0_1 = arith.constant 0 : index
    %c0_2 = arith.constant 0 : index
    %1 = vector.load %arg2[%c0_1, %c0_2] : memref<256x128xf32, #tpu.memory_space<vmem>>, vector<256x128xf32>
    %cst = arith.constant dense<0.000000e+00> : vector<32x128xf32>
    %2 = tpu.matmul %0, %1, %cst {dimension_numbers = #tpu.dot_dimension_numbers<[1], [0], [0], [1], [0, 0, 1, 1], [], []>} : vector<32x256xf32>, vector<256x128xf32>, vector<32x128xf32> -> vector<32x128xf32>
    %c0_3 = arith.constant 0 : index
    %c0_4 = arith.constant 0 : index
    %3 = vector.load %arg3[%c0_3, %c0_4] : memref<32x1xf32, #tpu.memory_space<vmem>>, vector<32x1xf32>
    %4 = vector.broadcast %3 : vector<32x1xf32> to vector<32x128xf32>
    %5 = arith.addf %2, %4 : vector<32x128xf32>
    %cst_5 = arith.constant 0.000000e+00 : f32
    %6 = vector.broadcast %cst_5 : f32 to vector<32x128xf32>
    %7 = arith.maximumf %5, %6 : vector<32x128xf32>
    %c0_6 = arith.constant 0 : index
    %c0_7 = arith.constant 0 : index
    %8 = vector.load %arg4[%c0_6, %c0_7] : memref<32x128xf32, #tpu.memory_space<vmem>>, vector<32x128xf32>
    tpu.vector_store %arg4[%c0_6, %c0_7], %7 {strides = array<i32>} : memref<32x128xf32, #tpu.memory_space<vmem>>, vector<32x128xf32>,
    return
  }
  func.func @transform_0(%arg0: i32) -> (i32, i32) {
    %c0_i32 = arith.constant 0 : i32
    %c0_i32_0 = arith.constant 0 : i32
    %c0_i32_1 = arith.constant 0 : i32
    return %c0_i32, %c0_i32_0 : i32, i32
  }
  func.func @transform_1(%arg0: i32) -> (i32, i32) {
    %c0_i32 = arith.constant 0 : i32
    %c0_i32_0 = arith.constant 0 : i32
    return %c0_i32, %arg0 : i32, i32
  }
  func.func @transform_2(%arg0: i32) -> (i32, i32) {
    %c0_i32 = arith.constant 0 : i32
    %c0_i32_0 = arith.constant 0 : i32
    %c0_i32_1 = arith.constant 0 : i32
    return %c0_i32, %c0_i32_0 : i32, i32
  }
  func.func @transform_3(%arg0: i32) -> (i32, i32) {
    %c0_i32 = arith.constant 0 : i32
    %c0_i32_0 = arith.constant 0 : i32
    return %c0_i32, %arg0 : i32, i32
  }
}

module attributes {stable_mosaic.version = 11 : i64} {
  func.func @_conv_mm_kernel(%arg0: i32, %arg1: memref<64x512xf32, #tpu.memory_space<vmem>>, %arg2: memref<512x128xf32, #tpu.memory_space<vmem>>, %arg3: memref<64x1xf32, #tpu.memory_space<vmem>>, %arg4: memref<64x128xf32, #tpu.memory_space<vmem>>) attributes {dimension_semantics = [#tpu.dimension_semantics<parallel>], iteration_bounds = array<i64: 1>, scalar_prefetch = 0 : i64, scratch_operands = 0 : i64, tpu.core_type = #tpu.core_type<tc>, window_params = [{pipeline_mode = #tpu.pipeline_mode<synchronous>, transform_indices = @transform_0, window_bounds = array<i64: 64, 512>}, {transform_indices = @transform_1, window_bounds = array<i64: 512, 128>}, {pipeline_mode = #tpu.pipeline_mode<synchronous>, transform_indices = @transform_2, window_bounds = array<i64: 64, 1>}, {transform_indices = @transform_3, window_bounds = array<i64: 64, 128>}]} {
    %c0 = arith.constant 0 : index
    %c0_0 = arith.constant 0 : index
    %0 = vector.load %arg1[%c0, %c0_0] : memref<64x512xf32, #tpu.memory_space<vmem>>, vector<64x512xf32>
    %c0_1 = arith.constant 0 : index
    %c0_2 = arith.constant 0 : index
    %1 = vector.load %arg2[%c0_1, %c0_2] : memref<512x128xf32, #tpu.memory_space<vmem>>, vector<512x128xf32>
    %cst = arith.constant dense<0.000000e+00> : vector<64x128xf32>
    %2 = tpu.matmul %0, %1, %cst {dimension_numbers = #tpu.dot_dimension_numbers<[1], [0], [0], [1], [0, 0, 1, 1], [], []>} : vector<64x512xf32>, vector<512x128xf32>, vector<64x128xf32> -> vector<64x128xf32>
    %c0_3 = arith.constant 0 : index
    %c0_4 = arith.constant 0 : index
    %3 = vector.load %arg3[%c0_3, %c0_4] : memref<64x1xf32, #tpu.memory_space<vmem>>, vector<64x1xf32>
    %4 = vector.broadcast %3 : vector<64x1xf32> to vector<64x128xf32>
    %5 = arith.addf %2, %4 : vector<64x128xf32>
    %cst_5 = arith.constant 0.000000e+00 : f32
    %6 = vector.broadcast %cst_5 : f32 to vector<64x128xf32>
    %7 = arith.maximumf %5, %6 : vector<64x128xf32>
    %c0_6 = arith.constant 0 : index
    %c0_7 = arith.constant 0 : index
    %8 = vector.load %arg4[%c0_6, %c0_7] : memref<64x128xf32, #tpu.memory_space<vmem>>, vector<64x128xf32>
    tpu.vector_store %arg4[%c0_6, %c0_7], %7 {strides = array<i32>} : memref<64x128xf32, #tpu.memory_space<vmem>>, vector<64x128xf32>,
    return
  }
  func.func @transform_0(%arg0: i32) -> (i32, i32) {
    %c0_i32 = arith.constant 0 : i32
    %c0_i32_0 = arith.constant 0 : i32
    %c0_i32_1 = arith.constant 0 : i32
    return %c0_i32, %c0_i32_0 : i32, i32
  }
  func.func @transform_1(%arg0: i32) -> (i32, i32) {
    %c0_i32 = arith.constant 0 : i32
    %c0_i32_0 = arith.constant 0 : i32
    return %c0_i32, %arg0 : i32, i32
  }
  func.func @transform_2(%arg0: i32) -> (i32, i32) {
    %c0_i32 = arith.constant 0 : i32
    %c0_i32_0 = arith.constant 0 : i32
    %c0_i32_1 = arith.constant 0 : i32
    return %c0_i32, %c0_i32_0 : i32, i32
  }
  func.func @transform_3(%arg0: i32) -> (i32, i32) {
    %c0_i32 = arith.constant 0 : i32
    %c0_i32_0 = arith.constant 0 : i32
    return %c0_i32, %arg0 : i32, i32
  }
}

module attributes {stable_mosaic.version = 11 : i64} {
  func.func @_mlp_kernel(%arg0: i32, %arg1: memref<8x64xf32, #tpu.memory_space<vmem>>, %arg2: memref<64x512xf32, #tpu.memory_space<vmem>>, %arg3: memref<1x512xf32, #tpu.memory_space<vmem>>, %arg4: memref<512x128xf32, #tpu.memory_space<vmem>>, %arg5: memref<1x128xf32, #tpu.memory_space<vmem>>, %arg6: memref<8x128xf32, #tpu.memory_space<vmem>>) attributes {dimension_semantics = [#tpu.dimension_semantics<parallel>], iteration_bounds = array<i64: 1>, scalar_prefetch = 0 : i64, scratch_operands = 0 : i64, tpu.core_type = #tpu.core_type<tc>, window_params = [{transform_indices = @transform_0, window_bounds = array<i64: 8, 64>}, {pipeline_mode = #tpu.pipeline_mode<synchronous>, transform_indices = @transform_1, window_bounds = array<i64: 64, 512>}, {pipeline_mode = #tpu.pipeline_mode<synchronous>, transform_indices = @transform_2, window_bounds = array<i64: 1, 512>}, {pipeline_mode = #tpu.pipeline_mode<synchronous>, transform_indices = @transform_3, window_bounds = array<i64: 512, 128>}, {pipeline_mode = #tpu.pipeline_mode<synchronous>, transform_indices = @transform_4, window_bounds = array<i64: 1, 128>}, {transform_indices = @transform_5, window_bounds = array<i64: 8, 128>}]} {
    %c0 = arith.constant 0 : index
    %c0_0 = arith.constant 0 : index
    %0 = vector.load %arg1[%c0, %c0_0] : memref<8x64xf32, #tpu.memory_space<vmem>>, vector<8x64xf32>
    %c0_1 = arith.constant 0 : index
    %c0_2 = arith.constant 0 : index
    %1 = vector.load %arg2[%c0_1, %c0_2] : memref<64x512xf32, #tpu.memory_space<vmem>>, vector<64x512xf32>
    %cst = arith.constant dense<0.000000e+00> : vector<8x512xf32>
    %2 = tpu.matmul %0, %1, %cst {dimension_numbers = #tpu.dot_dimension_numbers<[1], [0], [0], [1], [0, 0, 1, 1], [], []>} : vector<8x64xf32>, vector<64x512xf32>, vector<8x512xf32> -> vector<8x512xf32>
    %c0_3 = arith.constant 0 : index
    %c0_4 = arith.constant 0 : index
    %3 = vector.load %arg3[%c0_3, %c0_4] : memref<1x512xf32, #tpu.memory_space<vmem>>, vector<1x512xf32>
    %4 = vector.broadcast %3 : vector<1x512xf32> to vector<8x512xf32>
    %5 = arith.addf %2, %4 : vector<8x512xf32>
    %cst_5 = arith.constant 0.000000e+00 : f32
    %6 = vector.broadcast %cst_5 : f32 to vector<8x512xf32>
    %7 = arith.maximumf %5, %6 : vector<8x512xf32>
    %c0_6 = arith.constant 0 : index
    %c0_7 = arith.constant 0 : index
    %8 = vector.load %arg4[%c0_6, %c0_7] : memref<512x128xf32, #tpu.memory_space<vmem>>, vector<512x128xf32>
    %cst_8 = arith.constant dense<0.000000e+00> : vector<8x128xf32>
    %9 = tpu.matmul %7, %8, %cst_8 {dimension_numbers = #tpu.dot_dimension_numbers<[1], [0], [0], [1], [0, 0, 1, 1], [], []>} : vector<8x512xf32>, vector<512x128xf32>, vector<8x128xf32> -> vector<8x128xf32>
    %c0_9 = arith.constant 0 : index
    %c0_10 = arith.constant 0 : index
    %10 = vector.load %arg5[%c0_9, %c0_10] : memref<1x128xf32, #tpu.memory_space<vmem>>, vector<1x128xf32>
    %11 = vector.broadcast %10 : vector<1x128xf32> to vector<8x128xf32>
    %12 = arith.addf %9, %11 : vector<8x128xf32>
    %c0_11 = arith.constant 0 : index
    %c0_12 = arith.constant 0 : index
    %13 = vector.load %arg6[%c0_11, %c0_12] : memref<8x128xf32, #tpu.memory_space<vmem>>, vector<8x128xf32>
    tpu.vector_store %arg6[%c0_11, %c0_12], %12 {strides = array<i32>} : memref<8x128xf32, #tpu.memory_space<vmem>>, vector<8x128xf32>,
    return
  }
  func.func @transform_0(%arg0: i32) -> (i32, i32) {
    %c0_i32 = arith.constant 0 : i32
    %c0_i32_0 = arith.constant 0 : i32
    return %arg0, %c0_i32 : i32, i32
  }
  func.func @transform_1(%arg0: i32) -> (i32, i32) {
    %c0_i32 = arith.constant 0 : i32
    %c0_i32_0 = arith.constant 0 : i32
    %c0_i32_1 = arith.constant 0 : i32
    return %c0_i32, %c0_i32_0 : i32, i32
  }
  func.func @transform_2(%arg0: i32) -> (i32, i32) {
    %c0_i32 = arith.constant 0 : i32
    %c0_i32_0 = arith.constant 0 : i32
    %c0_i32_1 = arith.constant 0 : i32
    return %c0_i32, %c0_i32_0 : i32, i32
  }
  func.func @transform_3(%arg0: i32) -> (i32, i32) {
    %c0_i32 = arith.constant 0 : i32
    %c0_i32_0 = arith.constant 0 : i32
    %c0_i32_1 = arith.constant 0 : i32
    return %c0_i32, %c0_i32_0 : i32, i32
  }
  func.func @transform_4(%arg0: i32) -> (i32, i32) {
    %c0_i32 = arith.constant 0 : i32
    %c0_i32_0 = arith.constant 0 : i32
    %c0_i32_1 = arith.constant 0 : i32
    return %c0_i32, %c0_i32_0 : i32, i32
  }
  func.func @transform_5(%arg0: i32) -> (i32, i32) {
    %c0_i32 = arith.constant 0 : i32
    %c0_i32_0 = arith.constant 0 : i32
    return %arg0, %c0_i32 : i32, i32
  }
}

module attributes {stable_mosaic.version = 11 : i64} {
  func.func @_conv_mm_kernel(%arg0: i32, %arg1: memref<64x640xf32, #tpu.memory_space<vmem>>, %arg2: memref<640x128xf32, #tpu.memory_space<vmem>>, %arg3: memref<64x1xf32, #tpu.memory_space<vmem>>, %arg4: memref<64x128xf32, #tpu.memory_space<vmem>>) attributes {dimension_semantics = [#tpu.dimension_semantics<parallel>], iteration_bounds = array<i64: 1>, scalar_prefetch = 0 : i64, scratch_operands = 0 : i64, tpu.core_type = #tpu.core_type<tc>, window_params = [{pipeline_mode = #tpu.pipeline_mode<synchronous>, transform_indices = @transform_0, window_bounds = array<i64: 64, 640>}, {transform_indices = @transform_1, window_bounds = array<i64: 640, 128>}, {pipeline_mode = #tpu.pipeline_mode<synchronous>, transform_indices = @transform_2, window_bounds = array<i64: 64, 1>}, {transform_indices = @transform_3, window_bounds = array<i64: 64, 128>}]} {
    %c0 = arith.constant 0 : index
    %c0_0 = arith.constant 0 : index
    %0 = vector.load %arg1[%c0, %c0_0] : memref<64x640xf32, #tpu.memory_space<vmem>>, vector<64x640xf32>
    %c0_1 = arith.constant 0 : index
    %c0_2 = arith.constant 0 : index
    %1 = vector.load %arg2[%c0_1, %c0_2] : memref<640x128xf32, #tpu.memory_space<vmem>>, vector<640x128xf32>
    %cst = arith.constant dense<0.000000e+00> : vector<64x128xf32>
    %2 = tpu.matmul %0, %1, %cst {dimension_numbers = #tpu.dot_dimension_numbers<[1], [0], [0], [1], [0, 0, 1, 1], [], []>} : vector<64x640xf32>, vector<640x128xf32>, vector<64x128xf32> -> vector<64x128xf32>
    %c0_3 = arith.constant 0 : index
    %c0_4 = arith.constant 0 : index
    %3 = vector.load %arg3[%c0_3, %c0_4] : memref<64x1xf32, #tpu.memory_space<vmem>>, vector<64x1xf32>
    %4 = vector.broadcast %3 : vector<64x1xf32> to vector<64x128xf32>
    %5 = arith.addf %2, %4 : vector<64x128xf32>
    %cst_5 = arith.constant 0.000000e+00 : f32
    %6 = vector.broadcast %cst_5 : f32 to vector<64x128xf32>
    %7 = arith.maximumf %5, %6 : vector<64x128xf32>
    %c0_6 = arith.constant 0 : index
    %c0_7 = arith.constant 0 : index
    %8 = vector.load %arg4[%c0_6, %c0_7] : memref<64x128xf32, #tpu.memory_space<vmem>>, vector<64x128xf32>
    tpu.vector_store %arg4[%c0_6, %c0_7], %7 {strides = array<i32>} : memref<64x128xf32, #tpu.memory_space<vmem>>, vector<64x128xf32>,
    return
  }
  func.func @transform_0(%arg0: i32) -> (i32, i32) {
    %c0_i32 = arith.constant 0 : i32
    %c0_i32_0 = arith.constant 0 : i32
    %c0_i32_1 = arith.constant 0 : i32
    return %c0_i32, %c0_i32_0 : i32, i32
  }
  func.func @transform_1(%arg0: i32) -> (i32, i32) {
    %c0_i32 = arith.constant 0 : i32
    %c0_i32_0 = arith.constant 0 : i32
    return %c0_i32, %arg0 : i32, i32
  }
  func.func @transform_2(%arg0: i32) -> (i32, i32) {
    %c0_i32 = arith.constant 0 : i32
    %c0_i32_0 = arith.constant 0 : i32
    %c0_i32_1 = arith.constant 0 : i32
    return %c0_i32, %c0_i32_0 : i32, i32
  }
  func.func @transform_3(%arg0: i32) -> (i32, i32) {
    %c0_i32 = arith.constant 0 : i32
    %c0_i32_0 = arith.constant 0 : i32
    return %c0_i32, %arg0 : i32, i32
  }
}

</mosaic_0001>

<bundles_post_ra>
// kernel: atari_forward.4
= control target key start
LH: loop header
LB: loop body
LE: loop exit
PB: predicated region body
PF: predicated region fallthrough
CT: control target
= control target key end

     0   :  { %v270_v3 = vmov 0   ;;  %s435_s1 = inlined_call_operand.vmem [shape: f32[256,128], index: 1, kind: input, shape index: {}]   ;;  %s436_s0 = inlined_call_operand.vmem [shape: f32[32,256], index: 0, kind: input, shape index: {}]   ;;  %s437_s2 = inlined_call_operand.vmem [shape: f32[32,1], index: 2, kind: input, shape index: {}]   ;;  %s438_s3 = inlined_call_operand.vmem [shape: f32[32,128], index: 3, kind: output, shape index: {}]  }
   0x1   :  { %v38_v0 = vld [vmem:[%s435_s1 + $0x80] sm:$0xff]  ;;  %v39_v1 = vld [vmem:[%s435_s1 + $0x88] sm:$0xff]  ;;  %269 = vset.pattern.permute.xlu1 %v270_v3  ;;  %268 = vset.pattern.permute.xlu0 %v270_v3  ;;  %v40_v6 = vld [vmem:[%s435_s1 + $0x90] sm:$0xff] }
   0x2   :  { %v22_v2 = vld [vmem:[%s435_s1] sm:$0xff]  ;;  %v219_v4 = vpack.c.bf16 %v39_v1, %v38_v0  ;;  %v23_v5 = vld [vmem:[%s435_s1 + $0x8] sm:$0xff]  ;;  %v41_v7 = vld [vmem:[%s435_s1 + $0x98] sm:$0xff] }
   0x3   :  { %v221_v8 = vpack.c.bf16 %v23_v5, %v22_v2  ;;  %v223_v9 = vpack.c.bf16 %v41_v7, %v40_v6  ;;  %v24_v10 = vld [vmem:[%s435_s1 + $0x10] sm:$0xff]  ;;  %v25_v11 = vld [vmem:[%s435_s1 + $0x18] sm:$0xff]  ;;  %v42_v12 = vld [vmem:[%s435_s1 + $0xa0] sm:$0xff] }
   0x4   :  { %220 = vmatprep.subr.bf16.mxu0 %v219_v4  ;;  %251 = vmatprep.subr.bf16.mxu1 %v219_v4  ;;  %v43_v13 = vld [vmem:[%s435_s1 + $0xa8] sm:$0xff]  ;;  %v225_v14 = vpack.c.bf16 %v25_v11, %v24_v10  ;;  %v26_v16 = vld [vmem:[%s435_s1 + $0x20] sm:$0xff]  ;;  %v44_v18 = vld [vmem:[%s435_s1 + $0xb0] sm:$0xff] }
   0x5   :  { %222 = vmatpush3.bf16.msra.mxu0 %v221_v8  ;;  %259 = vmatpush3.bf16.msra.mxu1 %v221_v8  ;;  %v227_v15 = vpack.c.bf16 %v43_v13, %v42_v12  ;;  %v27_v17 = vld [vmem:[%s435_s1 + $0x28] sm:$0xff]  ;;  %v45_v19 = vld [vmem:[%s435_s1 + $0xb8] sm:$0xff]  ;;  %v28_v22 = vld [vmem:[%s435_s1 + $0x30] sm:$0xff] }
   0x6   :  { %224 = vmatprep.subr.bf16.mxu0 %v223_v9  ;;  %252 = vmatprep.subr.bf16.mxu1 %v223_v9  ;;  %v229_v20 = vpack.c.bf16 %v27_v17, %v26_v16  ;;  %v231_v21 = vpack.c.bf16 %v45_v19, %v44_v18  ;;  %v29_v23 = vld [vmem:[%s435_s1 + $0x38] sm:$0xff]  ;;  %v46_v24 = vld [vmem:[%s435_s1 + $0xc0] sm:$0xff]  ;;  %v47_v25 = vld [vmem:[%s435_s1 + $0xc8] sm:$0xff] }
   0x7   :  { %v15_v26 = vld [vmem:[%s436_s0 + $0x8] sm:$0xff]  ;;  %v233_v28 = vpack.c.bf16 %v29_v23, %v28_v22  ;;  %v30_v29 = vld [vmem:[%s435_s1 + $0x40] sm:$0xff]  ;;  %v235_v30 = vpack.c.bf16 %v47_v25, %v46_v24  ;;  %v56_v32 = vld [vmem:[%s437_s2 + $0x10] sm:$0xff] }
   0x8   :  { %142 = vmatprep.mubr.f32.mxu0 %v15_v26  ;;  %v19_v27 = vld [vmem:[%s436_s0 + $0x28] sm:$0xff]  ;;  %v54_v33 = vld [vmem:[%s437_s2] sm:$0xff]  ;;  %v48_v34 = vld [vmem:[%s435_s1 + $0xd0] sm:$0xff]  ;;  %70 = vperm.xlu1 %269, %v56_v32  }
   0x9   :  { %226 = vmatpush3.bf16.msra.mxu0 %v225_v14  ;;  %260 = vmatpush3.bf16.msra.mxu1 %v225_v14  ;;  %v31_v31 = vld [vmem:[%s435_s1 + $0x48] sm:$0xff]  ;;  %v49_v35 = vld [vmem:[%s435_s1 + $0xd8] sm:$0xff]  ;;  %v32_v40 = vld [vmem:[%s435_s1 + $0x50] sm:$0xff] }
   0xa   :  { %228 = vmatprep.subr.bf16.mxu0 %v227_v15  ;;  %253 = vmatprep.subr.bf16.mxu1 %v227_v15  ;;  %v57_v36 = vld [vmem:[%s437_s2 + $0x18] sm:$0xff]  ;;  %v237_v37 = vpack.c.bf16 %v31_v31, %v30_v29  ;;  %v55_v38 = vld [vmem:[%s437_s2 + $0x8] sm:$0xff]  ;;  %v239_v39 = vpack.c.bf16 %v49_v35, %v48_v34  ;;  %v50_v42 = vld [vmem:[%s435_s1 + $0xe0] sm:$0xff] }
   0xb   :  { %152 = vmatprep.mubr.f32.mxu1 %v19_v27  ;;  %60 = vperm.xlu0 %268, %v54_v33   ;;  %v33_v41 = vld [vmem:[%s435_s1 + $0x58] sm:$0xff]  ;;  %v51_v43 = vld [vmem:[%s435_s1 + $0xe8] sm:$0xff]  ;;  %v34_v46 = vld [vmem:[%s435_s1 + $0x60] sm:$0xff] }
   0xc   :  { %75 = vperm.xlu1 %269, %v57_v36   ;;  %v241_v44 = vpack.c.bf16 %v33_v41, %v32_v40  ;;  %v243_v45 = vpack.c.bf16 %v51_v43, %v50_v42  ;;  %v35_v47 = vld [vmem:[%s435_s1 + $0x68] sm:$0xff]  ;;  %v52_v48 = vld [vmem:[%s435_s1 + $0xf0] sm:$0xff]  ;;  %v53_v49 = vld [vmem:[%s435_s1 + $0xf8] sm:$0xff] }
   0xd   :  { %230 = vmatpush3.bf16.msra.mxu0 %v229_v20  ;;  %261 = vmatpush3.bf16.msra.mxu1 %v229_v20  ;;  %v245_v50 = vpack.c.bf16 %v35_v47, %v34_v46  ;;  %v247_v51 = vpack.c.bf16 %v53_v49, %v52_v48  ;;  %v36_v52 = vld [vmem:[%s435_s1 + $0x70] sm:$0xff]  ;;  %v37_v53 = vld [vmem:[%s435_s1 + $0x78] sm:$0xff]  ;;  %v14_v55 = vld [vmem:[%s436_s0] sm:$0xff] }
   0xe   :  { %232 = vmatprep.subr.bf16.mxu0 %v231_v21  ;;  %254 = vmatprep.subr.bf16.mxu1 %v231_v21  ;;  %v249_v54 = vpack.c.bf16 %v37_v53, %v36_v52  ;;  %v18_v56 = vld [vmem:[%s436_s0 + $0x20] sm:$0xff]  ;;  %v17_v57 = vld [vmem:[%s436_s0 + $0x18] sm:$0xff]  ;;  %v16_v59 = vld [vmem:[%s436_s0 + $0x10] sm:$0xff] }
   0xf   :  { %65 = vperm.xlu0 %268, %v55_v38   ;;  %v21_v58 = vld [vmem:[%s436_s0 + $0x38] sm:$0xff]  ;;  %v20_v60 = vld [vmem:[%s436_s0 + $0x30] sm:$0xff] }
  0x11   :  { %234 = vmatpush3.bf16.msra.mxu0 %v233_v28  ;;  %262 = vmatpush3.bf16.msra.mxu1 %v233_v28 }
  0x12   :  { %236 = vmatprep.subr.bf16.mxu0 %v235_v30  ;;  %255 = vmatprep.subr.bf16.mxu1 %v235_v30 }
  0x15   :  { %238 = vmatpush3.bf16.msra.mxu0 %v237_v37  ;;  %263 = vmatpush3.bf16.msra.mxu1 %v237_v37 }
  0x16   :  { %240 = vmatprep.subr.bf16.mxu0 %v239_v39  ;;  %256 = vmatprep.subr.bf16.mxu1 %v239_v39 }
  0x19   :  { %242 = vmatpush3.bf16.msra.mxu0 %v241_v44  ;;  %264 = vmatpush3.bf16.msra.mxu1 %v241_v44 }
  0x1a   :  { %244 = vmatprep.subr.bf16.mxu0 %v243_v45  ;;  %257 = vmatprep.subr.bf16.mxu1 %v243_v45 }
  0x1d   :  { %246 = vmatpush3.bf16.msra.mxu0 %v245_v50  ;;  %265 = vmatpush3.bf16.msra.mxu1 %v245_v50 }
  0x1e   :  { %248 = vmatprep.subr.bf16.mxu0 %v247_v51  ;;  %258 = vmatprep.subr.bf16.mxu1 %v247_v51 }
  0x21   :  { %250 = vmatpush3.bf16.msra.mxu0 %v249_v54  ;;  %266 = vmatpush3.bf16.msra.mxu1 %v249_v54 }
  0x24   :  { %143 = vmatmul.mubr.f32.vlgmr.msra.gmra.mrb[0].mxu0 %v14_v55  ;;  %153 = vmatmul.mubr.f32.vlgmr.msra.gmra.mrb[0].mxu1 %v18_v56 }
  0x25   :  { %147 = vmatprep.mubr.f32.mxu0 %v17_v57  ;;  %157 = vmatprep.mubr.f32.mxu1 %v21_v58 }
  0x28   :  { %148 = vmatmul.mubr.f32.gmra.mrb[2].mxu0 %v16_v59  ;;  %158 = vmatmul.mubr.f32.gmra.mrb[2].mxu1 %v20_v60 }
  0x87   :  { %v71_v61 = vpop.permute.xlu1 %70 }
  0x8a   :  { %v61_v62 = vpop.permute.xlu0 %60 }
  0x8b   :  { %v76_v15 = vpop.permute.xlu1 %75 }
  0x8e   :  { %v66_v16 = vpop.permute.xlu0 %65 }
  0xf7   :  { %v207_v63 = vpop.f32.mrb[0].mxu0  ;;  %v213_v0 = vpop.f32.mrb[0].mxu1 }
  0xf8   :  { %v208_v1 = vpop.f32.mrb[1].mxu0  ;;  %v214_v2 = vpop.f32.mrb[1].mxu1 }
  0xf9   :  { %v209_v3 = vadd.f32 %v208_v1, %v207_v63  ;;  %v215_v4 = vadd.f32 %v214_v2, %v213_v0 }
  0xfb   :  { %v145_v5 = vadd.f32 %v209_v3, %v61_v62  ;;  %v155_v6 = vadd.f32 %v215_v4, %v71_v61  ;;  %v210_v7 = vpop.f32.mrb[2].mxu0  ;;  %v216_v8 = vpop.f32.mrb[2].mxu1 }
  0xfc   :  { %v211_v9 = vpop.f32.mrb[3].mxu0  ;;  %v217_v10 = vpop.f32.mrb[3].mxu1 }
  0xfd   :  { %v163_v11 = vmax.f32 %v145_v5, 0.0  ;;  %v165_v12 = vmax.f32 %v155_v6, 0.0  ;;  %v212_v13 = vadd.f32 %v211_v9, %v210_v7  ;;  %v218_v14 = vadd.f32 %v217_v10, %v216_v8 }
  0xff   :  { %167 = vst [vmem:[%s438_s3] sm:$0xff] %v163_v11  ;;  %169 = vst [vmem:[%s438_s3 + $0x10] sm:$0xff] %v165_v12  ;;  %v150_v17 = vadd.f32 %v212_v13, %v66_v16  ;;  %v160_v18 = vadd.f32 %v218_v14, %v76_v15 }
 0x101   :  { %v164_v19 = vmax.f32 %v150_v17, 0.0  ;;  %v166_v20 = vmax.f32 %v160_v18, 0.0 }
 0x103   :  { %168 = vst [vmem:[%s438_s3 + $0x8] sm:$0xff] %v164_v19  ;;  %170 = vst [vmem:[%s438_s3 + $0x18] sm:$0xff] %v166_v20 }

// kernel: atari_forward.5
= control target key start
LH: loop header
LB: loop body
LE: loop exit
PB: predicated region body
PF: predicated region fallthrough
CT: control target
= control target key end

     0   :  { %v567_v3 = vmov 0   ;;  %s924_s1 = inlined_call_operand.vmem [shape: f32[512,128], index: 1, kind: input, shape index: {}]   ;;  %s925_s0 = inlined_call_operand.vmem [shape: f32[64,512], index: 0, kind: input, shape index: {}]   ;;  %s926_s2 = inlined_call_operand.vmem [shape: f32[64,1], index: 2, kind: input, shape index: {}]   ;;  %s927_s3 = inlined_call_operand.vmem [shape: f32[64,128], index: 3, kind: output, shape index: {}]  }
   0x1   :  { %v62_v0 = vld [vmem:[%s924_s1 + $0x80] sm:$0xff]  ;;  %v63_v1 = vld [vmem:[%s924_s1 + $0x88] sm:$0xff]  ;;  %565 = vset.pattern.permute.xlu0 %v567_v3  ;;  %566 = vset.pattern.permute.xlu1 %v567_v3  ;;  %v64_v12 = vld [vmem:[%s924_s1 + $0x90] sm:$0xff] }
   0x2   :  { %v46_v2 = vld [vmem:[%s924_s1] sm:$0xff]  ;;  %v500_v4 = vpack.c.bf16 %v63_v1, %v62_v0  ;;  %v47_v5 = vld [vmem:[%s924_s1 + $0x8] sm:$0xff]  ;;  %v65_v14 = vld [vmem:[%s924_s1 + $0x98] sm:$0xff] }
   0x3   :  { %v94_v6 = vld [vmem:[%s924_s1 + $0x180] sm:$0xff]  ;;  %v95_v7 = vld [vmem:[%s924_s1 + $0x188] sm:$0xff]  ;;  %v502_v8 = vpack.c.bf16 %v47_v5, %v46_v2  ;;  %v48_v15 = vld [vmem:[%s924_s1 + $0x10] sm:$0xff]  ;;  %v504_v17 = vpack.c.bf16 %v65_v14, %v64_v12 }
   0x4   :  { %v532_v9 = vpack.c.bf16 %v95_v7, %v94_v6  ;;  %v78_v10 = vld [vmem:[%s924_s1 + $0x100] sm:$0xff]  ;;  %v79_v11 = vld [vmem:[%s924_s1 + $0x108] sm:$0xff]  ;;  %501 = vmatprep.subr.bf16.mxu0 %v500_v4  ;;  %v49_v16 = vld [vmem:[%s924_s1 + $0x18] sm:$0xff] }
   0x5   :  { %v534_v13 = vpack.c.bf16 %v79_v11, %v78_v10  ;;  %503 = vmatpush3.bf16.msra.mxu0 %v502_v8  ;;  %v506_v18 = vpack.c.bf16 %v49_v16, %v48_v15  ;;  %v96_v19 = vld [vmem:[%s924_s1 + $0x190] sm:$0xff]  ;;  %v97_v20 = vld [vmem:[%s924_s1 + $0x198] sm:$0xff]  ;;  %v66_v24 = vld [vmem:[%s924_s1 + $0xa0] sm:$0xff] }
   0x6   :  { %533 = vmatprep.subr.bf16.mxu1 %v532_v9  ;;  %v80_v21 = vld [vmem:[%s924_s1 + $0x110] sm:$0xff]  ;;  %v536_v22 = vpack.c.bf16 %v97_v20, %v96_v19  ;;  %v81_v23 = vld [vmem:[%s924_s1 + $0x118] sm:$0xff]  ;;  %v67_v25 = vld [vmem:[%s924_s1 + $0xa8] sm:$0xff]  ;;  %505 = vmatprep.subr.bf16.mxu0 %v504_v17 }
   0x7   :  { %535 = vmatpush3.bf16.msra.mxu1 %v534_v13  ;;  %v538_v26 = vpack.c.bf16 %v81_v23, %v80_v21  ;;  %v508_v27 = vpack.c.bf16 %v67_v25, %v66_v24  ;;  %v50_v28 = vld [vmem:[%s924_s1 + $0x20] sm:$0xff]  ;;  %v51_v29 = vld [vmem:[%s924_s1 + $0x28] sm:$0xff]  ;;  %v68_v36 = vld [vmem:[%s924_s1 + $0xb0] sm:$0xff] }
   0x8   :  { %v98_v30 = vld [vmem:[%s924_s1 + $0x1a0] sm:$0xff]  ;;  %537 = vmatprep.subr.bf16.mxu1 %v536_v22  ;;  %v99_v31 = vld [vmem:[%s924_s1 + $0x1a8] sm:$0xff]  ;;  %v510_v34 = vpack.c.bf16 %v51_v29, %v50_v28  ;;  %v69_v37 = vld [vmem:[%s924_s1 + $0xb8] sm:$0xff] }
   0x9   :  { %v82_v32 = vld [vmem:[%s924_s1 + $0x120] sm:$0xff]  ;;  %v83_v33 = vld [vmem:[%s924_s1 + $0x128] sm:$0xff]  ;;  %507 = vmatpush3.bf16.msra.mxu0 %v506_v18  ;;  %v540_v35 = vpack.c.bf16 %v99_v31, %v98_v30  ;;  %v52_v38 = vld [vmem:[%s924_s1 + $0x30] sm:$0xff]  ;;  %v512_v40 = vpack.c.bf16 %v69_v37, %v68_v36 }
   0xa   :  { %509 = vmatprep.subr.bf16.mxu0 %v508_v27  ;;  %v542_v39 = vpack.c.bf16 %v83_v33, %v82_v32  ;;  %v53_v41 = vld [vmem:[%s924_s1 + $0x38] sm:$0xff]  ;;  %v100_v42 = vld [vmem:[%s924_s1 + $0x1b0] sm:$0xff]  ;;  %v70_v47 = vld [vmem:[%s924_s1 + $0xc0] sm:$0xff] }
   0xb   :  { %539 = vmatpush3.bf16.msra.mxu1 %v538_v26  ;;  %v101_v43 = vld [vmem:[%s924_s1 + $0x1b8] sm:$0xff]  ;;  %v84_v45 = vld [vmem:[%s924_s1 + $0x130] sm:$0xff]  ;;  %v71_v48 = vld [vmem:[%s924_s1 + $0xc8] sm:$0xff]  ;;  %v514_v49 = vpack.c.bf16 %v53_v41, %v52_v38 }
   0xc   :  { %541 = vmatprep.subr.bf16.mxu1 %v540_v35  ;;  %v544_v44 = vpack.c.bf16 %v101_v43, %v100_v42  ;;  %v85_v46 = vld [vmem:[%s924_s1 + $0x138] sm:$0xff]  ;;  %v102_v50 = vld [vmem:[%s924_s1 + $0x1c0] sm:$0xff]  ;;  %v103_v51 = vld [vmem:[%s924_s1 + $0x1c8] sm:$0xff]  ;;  %v516_v53 = vpack.c.bf16 %v71_v48, %v70_v47 }
   0xd   :  { %511 = vmatpush3.bf16.msra.mxu0 %v510_v34  ;;  %v546_v52 = vpack.c.bf16 %v85_v46, %v84_v45  ;;  %v54_v54 = vld [vmem:[%s924_s1 + $0x40] sm:$0xff]  ;;  %v55_v55 = vld [vmem:[%s924_s1 + $0x48] sm:$0xff]  ;;  %v548_v57 = vpack.c.bf16 %v103_v51, %v102_v50  ;;  %v72_v59 = vld [vmem:[%s924_s1 + $0xd0] sm:$0xff] }
   0xe   :  { %513 = vmatprep.subr.bf16.mxu0 %v512_v40  ;;  %v86_v56 = vld [vmem:[%s924_s1 + $0x140] sm:$0xff]  ;;  %v87_v58 = vld [vmem:[%s924_s1 + $0x148] sm:$0xff]  ;;  %v73_v60 = vld [vmem:[%s924_s1 + $0xd8] sm:$0xff]  ;;  %v518_v63 = vpack.c.bf16 %v55_v55, %v54_v54 }
   0xf   :  { %543 = vmatpush3.bf16.msra.mxu1 %v542_v39  ;;  %v104_v61 = vld [vmem:[%s924_s1 + $0x1d0] sm:$0xff]  ;;  %v105_v62 = vld [vmem:[%s924_s1 + $0x1d8] sm:$0xff]  ;;  %v550_v0 = vpack.c.bf16 %v87_v58, %v86_v56  ;;  %v520_v1 = vpack.c.bf16 %v73_v60, %v72_v59  ;;  %v74_v7 = vld [vmem:[%s924_s1 + $0xe0] sm:$0xff] }
  0x10   :  { %545 = vmatprep.subr.bf16.mxu1 %v544_v44  ;;  %v56_v2 = vld [vmem:[%s924_s1 + $0x50] sm:$0xff]  ;;  %v57_v3 = vld [vmem:[%s924_s1 + $0x58] sm:$0xff]  ;;  %v552_v5 = vpack.c.bf16 %v105_v62, %v104_v61  ;;  %v75_v8 = vld [vmem:[%s924_s1 + $0xe8] sm:$0xff] }
  0x11   :  { %515 = vmatpush3.bf16.msra.mxu0 %v514_v49  ;;  %v88_v4 = vld [vmem:[%s924_s1 + $0x150] sm:$0xff]  ;;  %v89_v6 = vld [vmem:[%s924_s1 + $0x158] sm:$0xff]  ;;  %v106_v9 = vld [vmem:[%s924_s1 + $0x1e0] sm:$0xff]  ;;  %v522_v11 = vpack.c.bf16 %v57_v3, %v56_v2  ;;  %v524_v15 = vpack.c.bf16 %v75_v8, %v74_v7 }
  0x12   :  { %517 = vmatprep.subr.bf16.mxu0 %v516_v53  ;;  %v107_v10 = vld [vmem:[%s924_s1 + $0x1e8] sm:$0xff]  ;;  %v58_v12 = vld [vmem:[%s924_s1 + $0x60] sm:$0xff]  ;;  %v554_v14 = vpack.c.bf16 %v89_v6, %v88_v4  ;;  %v76_v20 = vld [vmem:[%s924_s1 + $0xf0] sm:$0xff] }
  0x13   :  { %547 = vmatpush3.bf16.msra.mxu1 %v546_v52  ;;  %v59_v13 = vld [vmem:[%s924_s1 + $0x68] sm:$0xff]  ;;  %v90_v16 = vld [vmem:[%s924_s1 + $0x160] sm:$0xff]  ;;  %v556_v19 = vpack.c.bf16 %v107_v10, %v106_v9  ;;  %v77_v21 = vld [vmem:[%s924_s1 + $0xf8] sm:$0xff] }
  0x14   :  { %549 = vmatprep.subr.bf16.mxu1 %v548_v57  ;;  %v91_v17 = vld [vmem:[%s924_s1 + $0x168] sm:$0xff]  ;;  %v17_v22 = vld [vmem:[%s925_s0 + $0x18] sm:$0xff]  ;;  %v108_v23 = vld [vmem:[%s924_s1 + $0x1f0] sm:$0xff]  ;;  %v526_v25 = vpack.c.bf16 %v59_v13, %v58_v12  ;;  %v528_v27 = vpack.c.bf16 %v77_v21, %v76_v20 }
  0x15   :  { %519 = vmatpush3.bf16.msra.mxu0 %v518_v63  ;;  %v15_v18 = vld [vmem:[%s925_s0 + $0x8] sm:$0xff]  ;;  %v109_v24 = vld [vmem:[%s924_s1 + $0x1f8] sm:$0xff]  ;;  %327 = vmatprep.mubr.f32.mxu1 %v17_v22  ;;  %v558_v26 = vpack.c.bf16 %v91_v17, %v90_v16  ;;  %v60_v28 = vld [vmem:[%s924_s1 + $0x70] sm:$0xff] }
  0x16   :  { %521 = vmatprep.subr.bf16.mxu0 %v520_v1  ;;  %222 = vmatprep.mubr.f32.mxu0 %v15_v18  ;;  %v61_v29 = vld [vmem:[%s924_s1 + $0x78] sm:$0xff]  ;;  %v560_v30 = vpack.c.bf16 %v109_v24, %v108_v23  ;;  %v92_v31 = vld [vmem:[%s924_s1 + $0x170] sm:$0xff]  ;;  %v14_v35 = vld [vmem:[%s925_s0] sm:$0xff] }
  0x17   :  { %551 = vmatpush3.bf16.msra.mxu1 %v550_v0  ;;  %v93_v32 = vld [vmem:[%s924_s1 + $0x178] sm:$0xff]  ;;  %v530_v33 = vpack.c.bf16 %v61_v29, %v60_v28  ;;  %v110_v36 = vld [vmem:[%s926_s2] sm:$0xff]  ;;  %v112_v37 = vld [vmem:[%s926_s2 + $0x10] sm:$0xff] }
  0x18   :  { %553 = vmatprep.subr.bf16.mxu1 %v552_v5  ;;  %v562_v34 = vpack.c.bf16 %v93_v32, %v92_v31  ;;  %v16_v38 = vld [vmem:[%s925_s0 + $0x10] sm:$0xff]  ;;  %v19_v39 = vld [vmem:[%s925_s0 + $0x28] sm:$0xff]  ;;  %120 = vperm.xlu0 %565, %v110_v36   ;;  %v21_v40 = vld [vmem:[%s925_s0 + $0x38] sm:$0xff] }
  0x19   :  { %523 = vmatpush3.bf16.msra.mxu0 %v522_v11  ;;  %130 = vperm.xlu1 %566, %v112_v37   ;;  %v111_v41 = vld [vmem:[%s926_s2 + $0x8] sm:$0xff]  ;;  %v113_v42 = vld [vmem:[%s926_s2 + $0x18] sm:$0xff]  ;;  %v18_v43 = vld [vmem:[%s925_s0 + $0x20] sm:$0xff] }
  0x1a   :  { %525 = vmatprep.subr.bf16.mxu0 %v524_v15  ;;  %v20_v44 = vld [vmem:[%s925_s0 + $0x30] sm:$0xff]  ;;  %v23_v45 = vld [vmem:[%s925_s0 + $0x48] sm:$0xff]  ;;  %v25_v46 = vld [vmem:[%s925_s0 + $0x58] sm:$0xff] }
  0x1b   :  { %555 = vmatpush3.bf16.msra.mxu1 %v554_v14  ;;  %v114_v47 = vld [vmem:[%s926_s2 + $0x20] sm:$0xff]  ;;  %v115_v48 = vld [vmem:[%s926_s2 + $0x28] sm:$0xff]  ;;  %v24_v50 = vld [vmem:[%s925_s0 + $0x50] sm:$0xff] }
  0x1c   :  { %557 = vmatprep.subr.bf16.mxu1 %v556_v19  ;;  %125 = vperm.xlu0 %565, %v111_v41   ;;  %v22_v49 = vld [vmem:[%s925_s0 + $0x40] sm:$0xff]  ;;  %v27_v51 = vld [vmem:[%s925_s0 + $0x68] sm:$0xff]  ;;  %v29_v52 = vld [vmem:[%s925_s0 + $0x78] sm:$0xff] }
  0x1d   :  { %527 = vmatpush3.bf16.msra.mxu0 %v526_v25  ;;  %135 = vperm.xlu1 %566, %v113_v42   ;;  %v116_v53 = vld [vmem:[%s926_s2 + $0x30] sm:$0xff]  ;;  %v117_v54 = vld [vmem:[%s926_s2 + $0x38] sm:$0xff]  ;;  %v26_v55 = vld [vmem:[%s925_s0 + $0x60] sm:$0xff] }
  0x1e   :  { %529 = vmatprep.subr.bf16.mxu0 %v528_v27  ;;  %v28_v56 = vld [vmem:[%s925_s0 + $0x70] sm:$0xff]  ;;  %v31_v57 = vld [vmem:[%s925_s0 + $0x88] sm:$0xff]  ;;  %v33_v58 = vld [vmem:[%s925_s0 + $0x98] sm:$0xff] }
  0x1f   :  { %559 = vmatpush3.bf16.msra.mxu1 %v558_v26  ;;  %v30_v59 = vld [vmem:[%s925_s0 + $0x80] sm:$0xff]  ;;  %v32_v60 = vld [vmem:[%s925_s0 + $0x90] sm:$0xff]  ;;  %v35_v61 = vld [vmem:[%s925_s0 + $0xa8] sm:$0xff] }
  0x20   :  { %561 = vmatprep.subr.bf16.mxu1 %v560_v30  ;;  %140 = vperm.xlu0 %565, %v114_v47   ;;  %v37_v62 = vld [vmem:[%s925_s0 + $0xb8] sm:$0xff]  ;;  %v34_v63 = vld [vmem:[%s925_s0 + $0xa0] sm:$0xff]  ;;  %v36_v0 = vld [vmem:[%s925_s0 + $0xb0] sm:$0xff] }
  0x21   :  { %531 = vmatpush3.bf16.msra.mxu0 %v530_v33  ;;  %145 = vperm.xlu1 %566, %v115_v48   ;;  %v39_v1 = vld [vmem:[%s925_s0 + $0xc8] sm:$0xff]  ;;  %v41_v2 = vld [vmem:[%s925_s0 + $0xd8] sm:$0xff]  ;;  %v38_v3 = vld [vmem:[%s925_s0 + $0xc0] sm:$0xff] }
  0x22   :  { %v40_v4 = vld [vmem:[%s925_s0 + $0xd0] sm:$0xff]  ;;  %v43_v5 = vld [vmem:[%s925_s0 + $0xe8] sm:$0xff]  ;;  %v45_v6 = vld [vmem:[%s925_s0 + $0xf8] sm:$0xff] }
  0x23   :  { %563 = vmatpush3.bf16.msra.mxu1 %v562_v34  ;;  %v42_v7 = vld [vmem:[%s925_s0 + $0xe0] sm:$0xff]  ;;  %v44_v8 = vld [vmem:[%s925_s0 + $0xf0] sm:$0xff] }
  0x24   :  { %223 = vmatmul.mubr.f32.vlgmr.msra.gmra.mrb[0].mxu0 %v14_v35  ;;  %150 = vperm.xlu0 %565, %v116_v53  }
  0x25   :  { %227 = vmatprep.mubr.f32.mxu0 %v19_v39  ;;  %155 = vperm.xlu1 %566, %v117_v54  }
  0x26   :  { %328 = vmatmul.mubr.f32.vlgmr.msra.gmra.mrb[0].mxu1 %v16_v38 }
  0x27   :  { %332 = vmatprep.mubr.f32.mxu1 %v21_v40 }
  0x28   :  { %228 = vmatmul.mubr.f32.gmra.mrb[2].mxu0 %v18_v43 }
  0x29   :  { %232 = vmatprep.mubr.f32.mxu0 %v23_v45 }
  0x2a   :  { %333 = vmatmul.mubr.f32.gmra.mrb[2].mxu1 %v20_v44 }
  0x2b   :  { %337 = vmatprep.mubr.f32.mxu1 %v25_v46 }
  0x2c   :  { %233 = vmatmul.mubr.f32.gmra.mrb[4].mxu0 %v22_v49 }
  0x2d   :  { %237 = vmatprep.mubr.f32.mxu0 %v27_v51 }
  0x2e   :  { %338 = vmatmul.mubr.f32.gmra.mrb[4].mxu1 %v24_v50 }
  0x2f   :  { %342 = vmatprep.mubr.f32.mxu1 %v29_v52 }
  0x30   :  { %238 = vmatmul.mubr.f32.gmra.mrb[6].mxu0 %v26_v55 }
  0x31   :  { %242 = vmatprep.mubr.f32.mxu0 %v31_v57 }
  0x32   :  { %343 = vmatmul.mubr.f32.gmra.mrb[6].mxu1 %v28_v56 }
  0x33   :  { %347 = vmatprep.mubr.f32.mxu1 %v33_v58 }
  0x34   :  { %243 = vmatmul.mubr.f32.gmra.mrb[8].mxu0 %v30_v59 }
  0x35   :  { %247 = vmatprep.mubr.f32.mxu0 %v35_v61 }
  0x36   :  { %348 = vmatmul.mubr.f32.gmra.mrb[8].mxu1 %v32_v60 }
  0x37   :  { %352 = vmatprep.mubr.f32.mxu1 %v37_v62 }
  0x38   :  { %248 = vmatmul.mubr.f32.gmra.mrb[10].mxu0 %v34_v63 }
  0x39   :  { %252 = vmatprep.mubr.f32.mxu0 %v39_v1 }
  0x3a   :  { %353 = vmatmul.mubr.f32.gmra.mrb[10].mxu1 %v36_v0 }
  0x3b   :  { %357 = vmatprep.mubr.f32.mxu1 %v41_v2 }
  0x3c   :  { %253 = vmatmul.mubr.f32.gmra.mrb[12].mxu0 %v38_v3 }
  0x3d   :  { %257 = vmatprep.mubr.f32.mxu0 %v43_v5 }
  0x3e   :  { %358 = vmatmul.mubr.f32.gmra.mrb[12].mxu1 %v40_v4 }
  0x3f   :  { %362 = vmatprep.mubr.f32.mxu1 %v45_v6 }
  0x40   :  { %258 = vmatmul.mubr.f32.gmra.mrb[14].mxu0 %v42_v7 }
  0x42   :  { %363 = vmatmul.mubr.f32.gmra.mrb[14].mxu1 %v44_v8 }
  0x97   :  { %v121_v9 = vpop.permute.xlu0 %120 }
  0x98   :  { %v131_v26 = vpop.permute.xlu1 %130 }
  0x9b   :  { %v126_v18 = vpop.permute.xlu0 %125 }
  0x9c   :  { %v136_v43 = vpop.permute.xlu1 %135 }
  0x9f   :  { %v141_v53 = vpop.permute.xlu0 %140 }
  0xa0   :  { %v146_v63 = vpop.permute.xlu1 %145 }
  0xf7   :  { %v420_v10 = vpop.f32.mrb[0].mxu0 }
  0xf8   :  { %v421_v11 = vpop.f32.mrb[1].mxu0 }
  0xf9   :  { %v476_v12 = vpop.f32.mrb[0].mxu1  ;;  %v422_v13 = vadd.f32 %v421_v11, %v420_v10 }
  0xfa   :  { %v477_v14 = vpop.f32.mrb[1].mxu1 }
  0xfb   :  { %v478_v15 = vadd.f32 %v477_v14, %v476_v12  ;;  %v225_v16 = vadd.f32 %v422_v13, %v121_v9  ;;  %v423_v17 = vpop.f32.mrb[2].mxu0  ;;  %v151_v9 = vpop.permute.xlu0 %150 }
  0xfc   :  { %v424_v19 = vpop.f32.mrb[3].mxu0 }
  0xfd   :  { %v479_v20 = vpop.f32.mrb[2].mxu1  ;;  %v330_v21 = vadd.f32 %v478_v15, %v225_v16  ;;  %v425_v22 = vadd.f32 %v424_v19, %v423_v17  ;;  %v156_v19 = vpop.permute.xlu1 %155 }
  0xfe   :  { %v480_v23 = vpop.f32.mrb[3].mxu1 }
  0xff   :  { %v481_v24 = vadd.f32 %v480_v23, %v479_v20  ;;  %v368_v25 = vmax.f32 %v330_v21, 0.0  ;;  %v230_v27 = vadd.f32 %v425_v22, %v126_v18  ;;  %v426_v28 = vpop.f32.mrb[4].mxu0 }
 0x100   :  { %v427_v29 = vpop.f32.mrb[5].mxu0 }
 0x101   :  { %v482_v30 = vpop.f32.mrb[4].mxu1  ;;  %376 = vst [vmem:[%s927_s3] sm:$0xff] %v368_v25  ;;  %v335_v31 = vadd.f32 %v481_v24, %v230_v27  ;;  %v428_v32 = vadd.f32 %v427_v29, %v426_v28 }
 0x102   :  { %v483_v33 = vpop.f32.mrb[5].mxu1 }
 0x103   :  { %v484_v34 = vadd.f32 %v483_v33, %v482_v30  ;;  %v369_v35 = vmax.f32 %v335_v31, 0.0  ;;  %v235_v36 = vadd.f32 %v428_v32, %v131_v26  ;;  %v429_v37 = vpop.f32.mrb[6].mxu0 }
 0x104   :  { %v430_v38 = vpop.f32.mrb[7].mxu0 }
 0x105   :  { %v485_v39 = vpop.f32.mrb[6].mxu1  ;;  %377 = vst [vmem:[%s927_s3 + $0x8] sm:$0xff] %v369_v35  ;;  %v340_v40 = vadd.f32 %v484_v34, %v235_v36  ;;  %v431_v41 = vadd.f32 %v430_v38, %v429_v37 }
 0x106   :  { %v486_v42 = vpop.f32.mrb[7].mxu1 }
 0x107   :  { %v487_v44 = vadd.f32 %v486_v42, %v485_v39  ;;  %v370_v45 = vmax.f32 %v340_v40, 0.0  ;;  %v240_v46 = vadd.f32 %v431_v41, %v136_v43  ;;  %v432_v47 = vpop.f32.mrb[8].mxu0 }
 0x108   :  { %v433_v48 = vpop.f32.mrb[9].mxu0 }
 0x109   :  { %v488_v49 = vpop.f32.mrb[8].mxu1  ;;  %378 = vst [vmem:[%s927_s3 + $0x10] sm:$0xff] %v370_v45  ;;  %v345_v50 = vadd.f32 %v487_v44, %v240_v46  ;;  %v434_v51 = vadd.f32 %v433_v48, %v432_v47 }
 0x10a   :  { %v489_v52 = vpop.f32.mrb[9].mxu1 }
 0x10b   :  { %v490_v54 = vadd.f32 %v489_v52, %v488_v49  ;;  %v371_v55 = vmax.f32 %v345_v50, 0.0  ;;  %v245_v56 = vadd.f32 %v434_v51, %v141_v53  ;;  %v435_v57 = vpop.f32.mrb[10].mxu0 }
 0x10c   :  { %v436_v58 = vpop.f32.mrb[11].mxu0 }
 0x10d   :  { %v491_v59 = vpop.f32.mrb[10].mxu1  ;;  %379 = vst [vmem:[%s927_s3 + $0x18] sm:$0xff] %v371_v55  ;;  %v350_v60 = vadd.f32 %v490_v54, %v245_v56  ;;  %v437_v61 = vadd.f32 %v436_v58, %v435_v57 }
 0x10e   :  { %v492_v62 = vpop.f32.mrb[11].mxu1 }
 0x10f   :  { %v493_v0 = vadd.f32 %v492_v62, %v491_v59  ;;  %v372_v1 = vmax.f32 %v350_v60, 0.0  ;;  %v250_v2 = vadd.f32 %v437_v61, %v146_v63  ;;  %v438_v3 = vpop.f32.mrb[12].mxu0 }
 0x110   :  { %v439_v4 = vpop.f32.mrb[13].mxu0 }
 0x111   :  { %v494_v5 = vpop.f32.mrb[12].mxu1  ;;  %380 = vst [vmem:[%s927_s3 + $0x20] sm:$0xff] %v372_v1  ;;  %v355_v6 = vadd.f32 %v493_v0, %v250_v2  ;;  %v440_v7 = vadd.f32 %v439_v4, %v438_v3 }
 0x112   :  { %v495_v8 = vpop.f32.mrb[13].mxu1 }
 0x113   :  { %v496_v10 = vadd.f32 %v495_v8, %v494_v5  ;;  %v373_v11 = vmax.f32 %v355_v6, 0.0  ;;  %v255_v12 = vadd.f32 %v440_v7, %v151_v9  ;;  %v441_v13 = vpop.f32.mrb[14].mxu0 }
 0x114   :  { %v442_v14 = vpop.f32.mrb[15].mxu0 }
 0x115   :  { %v497_v15 = vpop.f32.mrb[14].mxu1  ;;  %381 = vst [vmem:[%s927_s3 + $0x28] sm:$0xff] %v373_v11  ;;  %v360_v16 = vadd.f32 %v496_v10, %v255_v12  ;;  %v443_v17 = vadd.f32 %v442_v14, %v441_v13 }
 0x116   :  { %v498_v18 = vpop.f32.mrb[15].mxu1 }
 0x117   :  { %v499_v20 = vadd.f32 %v498_v18, %v497_v15  ;;  %v374_v21 = vmax.f32 %v360_v16, 0.0  ;;  %v260_v22 = vadd.f32 %v443_v17, %v156_v19 }
 0x119   :  { %382 = vst [vmem:[%s927_s3 + $0x30] sm:$0xff] %v374_v21  ;;  %v365_v23 = vadd.f32 %v499_v20, %v260_v22 }
 0x11b   :  { %v375_v24 = vmax.f32 %v365_v23, 0.0 }
 0x11d   :  { %383 = vst [vmem:[%s927_s3 + $0x38] sm:$0xff] %v375_v24 }

// kernel: atari_forward.7
= control target key start
LH: loop header
LB: loop body
LE: loop exit
PB: predicated region body
PF: predicated region fallthrough
CT: control target
= control target key end

     0   :  { %v611_v3 = vmov 0.0   ;;  %vm75_vm0 = vcmask 523264   ;;  %s944_s1 = inlined_call_operand.vmem [shape: f32[64,512], index: 1, kind: input, shape index: {}]   ;;  %s945_s3 = inlined_call_operand.vmem [shape: f32[512,128], index: 3, kind: input, shape index: {}]   ;;  %s946_s0 = inlined_call_operand.vmem [shape: f32[8,64], index: 0, kind: input, shape index: {}]   ;;  %s947_s2 = inlined_call_operand.vmem [shape: f32[1,512], index: 2, kind: input, shape index: {}]   ;;  %s948_s4 = inlined_call_operand.vmem [shape: f32[1,128], index: 4, kind: input, shape index: {}]   ;;  %s949_s5 = inlined_call_operand.vmem [shape: f32[8,128], index: 5, kind: output, shape index: {}]  }
   0x1   :  { %v22_v0 = vld [vmem:[%s944_s1 + $0x8] sm:$0xff]  ;;  %v24_v2 = vld [vmem:[%s944_s1 + $0x18] sm:$0xff]  ;;  %143 = vmatprep.mubr.f32.mxu0 %v611_v3  ;;  %214 = vmatprep.mubr.f32.mxu1 %v611_v3  ;;  %v21_v6 = vld [vmem:[%s944_s1] sm:$0xff] }
   0x2   :  { %v26_v1 = vld [vmem:[%s944_s1 + $0x28] sm:$0xff]  ;;  %v28_v5 = vld [vmem:[%s944_s1 + $0x38] sm:$0xff]  ;;  %v25_v7 = vld [vmem:[%s944_s1 + $0x20] sm:$0xff] }
   0x3   :  { %v514_v4 = vpack.c.bf16 %v26_v1, %v22_v0  ;;  %v530_v8 = vpack.c.bf16 %v28_v5, %v24_v2  ;;  %v516_v9 = vpack.c.bf16 %v25_v7, %v21_v6  ;;  %v23_v10 = vld [vmem:[%s944_s1 + $0x10] sm:$0xff]  ;;  %v30_v12 = vld [vmem:[%s944_s1 + $0x48] sm:$0xff]  ;;  %v32_v15 = vld [vmem:[%s944_s1 + $0x58] sm:$0xff] }
   0x4   :  { %v27_v11 = vld [vmem:[%s944_s1 + $0x30] sm:$0xff]  ;;  %v34_v14 = vld [vmem:[%s944_s1 + $0x68] sm:$0xff]  ;;  %v36_v16 = vld [vmem:[%s944_s1 + $0x78] sm:$0xff] }
   0x5   :  { %515 = vmatprep.subr.bf16.mxu0 %v514_v4  ;;  %v532_v13 = vpack.c.bf16 %v27_v11, %v23_v10  ;;  %531 = vmatprep.subr.bf16.mxu1 %v530_v8  ;;  %v518_v17 = vpack.c.bf16 %v34_v14, %v30_v12  ;;  %v534_v18 = vpack.c.bf16 %v36_v16, %v32_v15  ;;  %v29_v19 = vld [vmem:[%s944_s1 + $0x40] sm:$0xff]  ;;  %v31_v21 = vld [vmem:[%s944_s1 + $0x50] sm:$0xff]  ;;  %v38_v24 = vld [vmem:[%s944_s1 + $0x88] sm:$0xff] }
   0x6   :  { %517 = vmatpush1.bf16.msra.mxu0 %v516_v9  ;;  %v33_v20 = vld [vmem:[%s944_s1 + $0x60] sm:$0xff]  ;;  %v35_v23 = vld [vmem:[%s944_s1 + $0x70] sm:$0xff]  ;;  %v42_v25 = vld [vmem:[%s944_s1 + $0xa8] sm:$0xff] }
   0x7   :  { %533 = vmatpush1.bf16.msra.mxu1 %v532_v13  ;;  %v520_v22 = vpack.c.bf16 %v33_v20, %v29_v19  ;;  %519 = vmatprep.subr.bf16.mxu0 %v518_v17  ;;  %v536_v26 = vpack.c.bf16 %v35_v23, %v31_v21  ;;  %v522_v27 = vpack.c.bf16 %v42_v25, %v38_v24  ;;  %v40_v28 = vld [vmem:[%s944_s1 + $0x98] sm:$0xff]  ;;  %v37_v30 = vld [vmem:[%s944_s1 + $0x80] sm:$0xff]  ;;  %v39_v33 = vld [vmem:[%s944_s1 + $0x90] sm:$0xff] }
   0x8   :  { %535 = vmatprep.subr.bf16.mxu1 %v534_v18  ;;  %v44_v29 = vld [vmem:[%s944_s1 + $0xb8] sm:$0xff]  ;;  %v41_v32 = vld [vmem:[%s944_s1 + $0xa0] sm:$0xff]  ;;  %v43_v34 = vld [vmem:[%s944_s1 + $0xb0] sm:$0xff] }
   0x9   :  { %v538_v31 = vpack.c.bf16 %v44_v29, %v40_v28  ;;  %v524_v35 = vpack.c.bf16 %v41_v32, %v37_v30  ;;  %v46_v36 = vld [vmem:[%s944_s1 + $0xc8] sm:$0xff]  ;;  %v48_v38 = vld [vmem:[%s944_s1 + $0xd8] sm:$0xff]  ;;  %v540_v39 = vpack.c.bf16 %v43_v34, %v39_v33  ;;  %v45_v42 = vld [vmem:[%s944_s1 + $0xc0] sm:$0xff] }
   0xa   :  { %521 = vmatpush1.bf16.msra.mxu0 %v520_v22  ;;  %v50_v37 = vld [vmem:[%s944_s1 + $0xe8] sm:$0xff]  ;;  %v52_v41 = vld [vmem:[%s944_s1 + $0xf8] sm:$0xff]  ;;  %v49_v43 = vld [vmem:[%s944_s1 + $0xe0] sm:$0xff] }
   0xb   :  { %537 = vmatpush1.bf16.msra.mxu1 %v536_v26  ;;  %523 = vmatprep.subr.bf16.mxu0 %v522_v27  ;;  %v526_v40 = vpack.c.bf16 %v50_v37, %v46_v36  ;;  %v542_v44 = vpack.c.bf16 %v52_v41, %v48_v38  ;;  %v47_v45 = vld [vmem:[%s944_s1 + $0xd0] sm:$0xff]  ;;  %v241_v47 = vld [vmem:[%s945_s3 + $0x80] sm:$0xff]  ;;  %v242_v48 = vld [vmem:[%s945_s3 + $0x88] sm:$0xff]  ;;  %v528_v50 = vpack.c.bf16 %v49_v43, %v45_v42 }
   0xc   :  { %539 = vmatprep.subr.bf16.mxu1 %v538_v31  ;;  %v51_v46 = vld [vmem:[%s944_s1 + $0xf0] sm:$0xff]  ;;  %v273_v49 = vld [vmem:[%s945_s3 + $0x180] sm:$0xff]  ;;  %v274_v51 = vld [vmem:[%s945_s3 + $0x188] sm:$0xff]  ;;  %v546_v53 = vpack.c.bf16 %v242_v48, %v241_v47 }
   0xd   :  { %v544_v52 = vpack.c.bf16 %v51_v46, %v47_v45  ;;  %v225_v54 = vld [vmem:[%s945_s3] sm:$0xff]  ;;  %v226_v55 = vld [vmem:[%s945_s3 + $0x8] sm:$0xff]  ;;  %v578_v57 = vpack.c.bf16 %v274_v51, %v273_v49  ;;  %v243_v59 = vld [vmem:[%s945_s3 + $0x90] sm:$0xff] }
   0xe   :  { %525 = vmatpush1.bf16.msra.mxu0 %v524_v35  ;;  %v257_v56 = vld [vmem:[%s945_s3 + $0x100] sm:$0xff]  ;;  %v258_v58 = vld [vmem:[%s945_s3 + $0x108] sm:$0xff]  ;;  %v244_v60 = vld [vmem:[%s945_s3 + $0x98] sm:$0xff]  ;;  %v548_v0 = vpack.c.bf16 %v226_v55, %v225_v54 }
   0xf   :  { %541 = vmatpush1.bf16.msra.mxu1 %v540_v39  ;;  %527 = vmatprep.subr.bf16.mxu0 %v526_v40  ;;  %v275_v61 = vld [vmem:[%s945_s3 + $0x190] sm:$0xff]  ;;  %v276_v62 = vld [vmem:[%s945_s3 + $0x198] sm:$0xff]  ;;  %v20_v63 = vld [vmem:[%s946_s0] sm:$0xff]  ;;  %v580_v1 = vpack.c.bf16 %v258_v58, %v257_v56  ;;  %v550_v2 = vpack.c.bf16 %v244_v60, %v243_v59 }
  0x10   :  { %543 = vmatprep.subr.bf16.mxu1 %v542_v44  ;;  %v227_v3 = vld [vmem:[%s945_s3 + $0x10] sm:$0xff]  ;;  %v228_v4 = vld [vmem:[%s945_s3 + $0x18] sm:$0xff]  ;;  %v582_v6 = vpack.c.bf16 %v276_v62, %v275_v61  ;;  %v245_v8 = vld [vmem:[%s945_s3 + $0xa0] sm:$0xff] }
  0x11   :  { %v259_v5 = vld [vmem:[%s945_s3 + $0x110] sm:$0xff]  ;;  %v260_v7 = vld [vmem:[%s945_s3 + $0x118] sm:$0xff]  ;;  %v246_v9 = vld [vmem:[%s945_s3 + $0xa8] sm:$0xff]  ;;  %v552_v12 = vpack.c.bf16 %v228_v4, %v227_v3 }
  0x12   :  { %529 = vmatpush1.bf16.msra.mxu0 %v528_v50  ;;  %v277_v10 = vld [vmem:[%s945_s3 + $0x1a0] sm:$0xff]  ;;  %v278_v11 = vld [vmem:[%s945_s3 + $0x1a8] sm:$0xff]  ;;  %v584_v13 = vpack.c.bf16 %v260_v7, %v259_v5  ;;  %v554_v14 = vpack.c.bf16 %v246_v9, %v245_v8  ;;  %v247_v20 = vld [vmem:[%s945_s3 + $0xb0] sm:$0xff] }
  0x13   :  { %545 = vmatpush1.bf16.msra.mxu1 %v544_v52  ;;  %547 = vmatprep.subr.bf16.mxu0 %v546_v53  ;;  %v229_v15 = vld [vmem:[%s945_s3 + $0x20] sm:$0xff]  ;;  %v230_v16 = vld [vmem:[%s945_s3 + $0x28] sm:$0xff]  ;;  %v586_v18 = vpack.c.bf16 %v278_v11, %v277_v10  ;;  %v248_v21 = vld [vmem:[%s945_s3 + $0xb8] sm:$0xff] }
  0x14   :  { %579 = vmatprep.subr.bf16.mxu1 %v578_v57  ;;  %v261_v17 = vld [vmem:[%s945_s3 + $0x120] sm:$0xff]  ;;  %v262_v19 = vld [vmem:[%s945_s3 + $0x128] sm:$0xff]  ;;  %v279_v22 = vld [vmem:[%s945_s3 + $0x1b0] sm:$0xff]  ;;  %v556_v24 = vpack.c.bf16 %v230_v16, %v229_v15  ;;  %v558_v26 = vpack.c.bf16 %v248_v21, %v247_v20 }
  0x15   :  { %441 = vmatmul.mubr.msk.f32.vlgmr.msra.gmra.mrb[0].mxu0 %vm75_vm0, %v20_v63  ;;  %v280_v23 = vld [vmem:[%s945_s3 + $0x1b8] sm:$0xff]  ;;  %v588_v25 = vpack.c.bf16 %v262_v19, %v261_v17  ;;  %v231_v27 = vld [vmem:[%s945_s3 + $0x30] sm:$0xff]  ;;  %v249_v32 = vld [vmem:[%s945_s3 + $0xc0] sm:$0xff] }
  0x16   :  { %442 = vmatmul.mubr.msk.f32.vlgmr.msra.gmra.mrb[0].mxu1 %vm75_vm0, %v20_v63  ;;  %549 = vmatpush3.bf16.msra.mxu0 %v548_v0  ;;  %v232_v28 = vld [vmem:[%s945_s3 + $0x38] sm:$0xff]  ;;  %v263_v29 = vld [vmem:[%s945_s3 + $0x130] sm:$0xff]  ;;  %v590_v30 = vpack.c.bf16 %v280_v23, %v279_v22  ;;  %v250_v33 = vld [vmem:[%s945_s3 + $0xc8] sm:$0xff] }
  0x17   :  { %581 = vmatpush3.bf16.msra.mxu1 %v580_v1  ;;  %551 = vmatprep.subr.bf16.mxu0 %v550_v2  ;;  %v264_v31 = vld [vmem:[%s945_s3 + $0x138] sm:$0xff]  ;;  %v281_v34 = vld [vmem:[%s945_s3 + $0x1c0] sm:$0xff]  ;;  %v282_v35 = vld [vmem:[%s945_s3 + $0x1c8] sm:$0xff]  ;;  %v560_v36 = vpack.c.bf16 %v232_v28, %v231_v27  ;;  %v562_v38 = vpack.c.bf16 %v250_v33, %v249_v32 }
  0x18   :  { %583 = vmatprep.subr.bf16.mxu1 %v582_v6  ;;  %v592_v37 = vpack.c.bf16 %v264_v31, %v263_v29  ;;  %v233_v39 = vld [vmem:[%s945_s3 + $0x40] sm:$0xff]  ;;  %v234_v40 = vld [vmem:[%s945_s3 + $0x48] sm:$0xff]  ;;  %v594_v42 = vpack.c.bf16 %v282_v35, %v281_v34  ;;  %v251_v44 = vld [vmem:[%s945_s3 + $0xd0] sm:$0xff] }
  0x19   :  { %v265_v41 = vld [vmem:[%s945_s3 + $0x140] sm:$0xff]  ;;  %v266_v43 = vld [vmem:[%s945_s3 + $0x148] sm:$0xff]  ;;  %v252_v45 = vld [vmem:[%s945_s3 + $0xd8] sm:$0xff]  ;;  %v564_v48 = vpack.c.bf16 %v234_v40, %v233_v39 }
  0x1a   :  { %553 = vmatpush3.bf16.msra.mxu0 %v552_v12  ;;  %v283_v46 = vld [vmem:[%s945_s3 + $0x1d0] sm:$0xff]  ;;  %v284_v47 = vld [vmem:[%s945_s3 + $0x1d8] sm:$0xff]  ;;  %v596_v49 = vpack.c.bf16 %v266_v43, %v265_v41  ;;  %v566_v50 = vpack.c.bf16 %v252_v45, %v251_v44  ;;  %v253_v56 = vld [vmem:[%s945_s3 + $0xe0] sm:$0xff] }
  0x1b   :  { %585 = vmatpush3.bf16.msra.mxu1 %v584_v13  ;;  %555 = vmatprep.subr.bf16.mxu0 %v554_v14  ;;  %v235_v51 = vld [vmem:[%s945_s3 + $0x50] sm:$0xff]  ;;  %v236_v52 = vld [vmem:[%s945_s3 + $0x58] sm:$0xff]  ;;  %v598_v54 = vpack.c.bf16 %v284_v47, %v283_v46  ;;  %v254_v57 = vld [vmem:[%s945_s3 + $0xe8] sm:$0xff] }
  0x1c   :  { %587 = vmatprep.subr.bf16.mxu1 %v586_v18  ;;  %v267_v53 = vld [vmem:[%s945_s3 + $0x150] sm:$0xff]  ;;  %v268_v55 = vld [vmem:[%s945_s3 + $0x158] sm:$0xff]  ;;  %v285_v58 = vld [vmem:[%s945_s3 + $0x1e0] sm:$0xff]  ;;  %v568_v60 = vpack.c.bf16 %v236_v52, %v235_v51  ;;  %v570_v62 = vpack.c.bf16 %v254_v57, %v253_v56  ;;  %v55_v18 = vlaneseq }
  0x1d   :  { %v286_v59 = vld [vmem:[%s945_s3 + $0x1e8] sm:$0xff]  ;;  %v600_v61 = vpack.c.bf16 %v268_v55, %v267_v53  ;;  %v237_v0 = vld [vmem:[%s945_s3 + $0x60] sm:$0xff]  ;;  %v255_v6 = vld [vmem:[%s945_s3 + $0xf0] sm:$0xff] }
  0x1e   :  { %557 = vmatpush3.bf16.msra.mxu0 %v556_v24  ;;  %v602_v63 = vpack.c.bf16 %v286_v59, %v285_v58  ;;  %v238_v1 = vld [vmem:[%s945_s3 + $0x68] sm:$0xff]  ;;  %v269_v2 = vld [vmem:[%s945_s3 + $0x160] sm:$0xff]  ;;  %v256_v7 = vld [vmem:[%s945_s3 + $0xf8] sm:$0xff]  ;;  %v56_v19 = vshrl.u32 %v55_v18, 7 }
  0x1f   :  { %589 = vmatpush3.bf16.msra.mxu1 %v588_v25  ;;  %559 = vmatprep.subr.bf16.mxu0 %v558_v26  ;;  %v572_v3 = vpack.c.bf16 %v238_v1, %v237_v0  ;;  %v270_v4 = vld [vmem:[%s945_s3 + $0x168] sm:$0xff]  ;;  %v287_v8 = vld [vmem:[%s945_s3 + $0x1f0] sm:$0xff]  ;;  %v574_v9 = vpack.c.bf16 %v256_v7, %v255_v6  ;;  %v288_v10 = vld [vmem:[%s945_s3 + $0x1f8] sm:$0xff] }
  0x20   :  { %591 = vmatprep.subr.bf16.mxu1 %v590_v30  ;;  %v604_v5 = vpack.c.bf16 %v270_v4, %v269_v2  ;;  %v239_v11 = vld [vmem:[%s945_s3 + $0x70] sm:$0xff]  ;;  %v240_v12 = vld [vmem:[%s945_s3 + $0x78] sm:$0xff]  ;;  %v606_v13 = vpack.c.bf16 %v288_v10, %v287_v8  ;;  %v57_v20 = vsub.s32 0, %v56_v19  ;;  %v53_v21 = vld [vmem:[%s947_s2] sm:$0xf]  ;;  %v65_v22 = vsub.s32 2, %v56_v19 }
  0x21   :  { %v576_v14 = vpack.c.bf16 %v240_v12, %v239_v11  ;;  %v271_v15 = vld [vmem:[%s945_s3 + $0x170] sm:$0xff]  ;;  %v272_v16 = vld [vmem:[%s945_s3 + $0x178] sm:$0xff]  ;;  %v61_v23 = vsub.s32 1, %v56_v19  ;;  %v69_v24 = vsub.s32 3, %v56_v19  ;;  %v443_v43 = vld [vmem:[%s948_s4] ss:$0 sm:$0xff] }
  0x22   :  { %561 = vmatpush3.bf16.msra.mxu0 %v560_v36  ;;  %v608_v17 = vpack.c.bf16 %v272_v16, %v271_v15  ;;  %v58_v25 = vrot.slane %v53_v21, %v57_v20  ;;  %v66_v26 = vrot.slane %v53_v21, %v65_v22 }
  0x23   :  { %593 = vmatpush3.bf16.msra.mxu1 %v592_v37  ;;  %563 = vmatprep.subr.bf16.mxu0 %v562_v38  ;;  %v62_v27 = vrot.slane %v53_v21, %v61_v23  ;;  %v70_v28 = vrot.slane %v53_v21, %v69_v24 }
  0x24   :  { %595 = vmatprep.subr.bf16.mxu1 %v594_v42 }
  0x26   :  { %565 = vmatpush3.bf16.msra.mxu0 %v564_v48 }
  0x27   :  { %597 = vmatpush3.bf16.msra.mxu1 %v596_v49  ;;  %567 = vmatprep.subr.bf16.mxu0 %v566_v50 }
  0x28   :  { %599 = vmatprep.subr.bf16.mxu1 %v598_v54 }
  0x2a   :  { %569 = vmatpush3.bf16.msra.mxu0 %v568_v60 }
  0x2b   :  { %601 = vmatpush3.bf16.msra.mxu1 %v600_v61  ;;  %571 = vmatprep.subr.bf16.mxu0 %v570_v62 }
  0x2c   :  { %603 = vmatprep.subr.bf16.mxu1 %v602_v63 }
  0x2e   :  { %573 = vmatpush3.bf16.msra.mxu0 %v572_v3 }
  0x2f   :  { %605 = vmatpush3.bf16.msra.mxu1 %v604_v5  ;;  %575 = vmatprep.subr.bf16.mxu0 %v574_v9 }
  0x30   :  { %607 = vmatprep.subr.bf16.mxu1 %v606_v13 }
  0x32   :  { %577 = vmatpush3.bf16.msra.mxu0 %v576_v14 }
  0x33   :  { %609 = vmatpush3.bf16.msra.mxu1 %v608_v17 }
  0xe8   :  { %v145_v29 = vpop.f32.mrb[0].mxu0 }
  0xe9   :  { %v146_v30 = vadd.f32 %v145_v29, %v58_v25  ;;  %v216_v31 = vpop.f32.mrb[0].mxu1  ;;  %v147_v32 = vpop.f32.mrb[1].mxu0 }
  0xea   :  { %v217_v33 = vadd.f32 %v216_v31, %v66_v26  ;;  %v148_v34 = vadd.f32 %v147_v32, %v62_v27  ;;  %v218_v35 = vpop.f32.mrb[1].mxu1 }
  0xeb   :  { %v219_v36 = vadd.f32 %v218_v35, %v70_v28  ;;  %v221_v39 = vmax.f32 %v146_v30, 0.0 }
  0xec   :  { %v223_v37 = vmax.f32 %v217_v33, 0.0  ;;  %v222_v38 = vmax.f32 %v148_v34, 0.0 }
  0xed   :  { %v224_v40 = vmax.f32 %v219_v36, 0.0 }
  0xee   :  { %360 = vmatprep.mubr.f32.mxu0 %v222_v38 }
  0xef   :  { %430 = vmatprep.mubr.f32.mxu1 %v224_v40  ;;  %361 = vmatmul.mubr.f32.vlgmr.msra.gmra.mrb[2].mxu0 %v221_v39 }
  0xf0   :  { %431 = vmatmul.mubr.f32.vlgmr.msra.gmra.mrb[2].mxu1 %v223_v37 }
 0x1c2   :  { %v476_v41 = vpop.f32.mrb[2].mxu0 }
 0x1c3   :  { %v511_v42 = vpop.f32.mrb[2].mxu1  ;;  %v477_v44 = vpop.f32.mrb[3].mxu0 }
 0x1c4   :  { %v478_v45 = vadd.f32 %v477_v44, %v476_v41  ;;  %v512_v46 = vpop.f32.mrb[3].mxu1 }
 0x1c5   :  { %v513_v47 = vadd.f32 %v512_v46, %v511_v42 }
 0x1c6   :  { %v363_v48 = vadd.f32 %v478_v45, %v443_v43 }
 0x1c8   :  { %v433_v49 = vadd.f32 %v513_v47, %v363_v48 }
 0x1ca   :  { %436 = vst [vmem:[%s949_s5] sm:$0xff] %v433_v49 }

// kernel: atari_forward.6
= control target key start
LH: loop header
LB: loop body
LE: loop exit
PB: predicated region body
PF: predicated region fallthrough
CT: control target
= control target key end

     0   :  { %v812_v3 = vmov 0   ;;  %s1244_s1 = inlined_call_operand.vmem [shape: f32[640,128], index: 1, kind: input, shape index: {}]   ;;  %s1245_s0 = inlined_call_operand.vmem [shape: f32[64,640], index: 0, kind: input, shape index: {}]   ;;  %s1246_s2 = inlined_call_operand.vmem [shape: f32[64,1], index: 2, kind: input, shape index: {}]   ;;  %s1247_s3 = inlined_call_operand.vmem [shape: f32[64,128], index: 3, kind: output, shape index: {}]  }
   0x1   :  { %v70_v0 = vld [vmem:[%s1244_s1 + $0x80] sm:$0xff]  ;;  %v71_v1 = vld [vmem:[%s1244_s1 + $0x88] sm:$0xff]  ;;  %810 = vset.pattern.permute.xlu0 %v812_v3  ;;  %811 = vset.pattern.permute.xlu1 %v812_v3  ;;  %v72_v12 = vld [vmem:[%s1244_s1 + $0x90] sm:$0xff] }
   0x2   :  { %v102_v2 = vld [vmem:[%s1244_s1 + $0x180] sm:$0xff]  ;;  %v697_v4 = vpack.c.bf16 %v71_v1, %v70_v0  ;;  %v103_v5 = vld [vmem:[%s1244_s1 + $0x188] sm:$0xff]  ;;  %v73_v14 = vld [vmem:[%s1244_s1 + $0x98] sm:$0xff] }
   0x3   :  { %v54_v6 = vld [vmem:[%s1244_s1] sm:$0xff]  ;;  %v55_v7 = vld [vmem:[%s1244_s1 + $0x8] sm:$0xff]  ;;  %v729_v8 = vpack.c.bf16 %v103_v5, %v102_v2  ;;  %v104_v15 = vld [vmem:[%s1244_s1 + $0x190] sm:$0xff]  ;;  %v701_v17 = vpack.c.bf16 %v73_v14, %v72_v12 }
   0x4   :  { %v699_v9 = vpack.c.bf16 %v55_v7, %v54_v6  ;;  %v86_v10 = vld [vmem:[%s1244_s1 + $0x100] sm:$0xff]  ;;  %v87_v11 = vld [vmem:[%s1244_s1 + $0x108] sm:$0xff]  ;;  %698 = vmatprep.subr.bf16.mxu0 %v697_v4  ;;  %v105_v16 = vld [vmem:[%s1244_s1 + $0x198] sm:$0xff] }
   0x5   :  { %v731_v13 = vpack.c.bf16 %v87_v11, %v86_v10  ;;  %730 = vmatprep.subr.bf16.mxu1 %v729_v8  ;;  %v733_v18 = vpack.c.bf16 %v105_v16, %v104_v15  ;;  %v56_v19 = vld [vmem:[%s1244_s1 + $0x10] sm:$0xff]  ;;  %v57_v20 = vld [vmem:[%s1244_s1 + $0x18] sm:$0xff]  ;;  %v74_v24 = vld [vmem:[%s1244_s1 + $0xa0] sm:$0xff] }
   0x6   :  { %700 = vmatpush3.bf16.msra.mxu0 %v699_v9  ;;  %v88_v21 = vld [vmem:[%s1244_s1 + $0x110] sm:$0xff]  ;;  %v703_v22 = vpack.c.bf16 %v57_v20, %v56_v19  ;;  %v89_v23 = vld [vmem:[%s1244_s1 + $0x118] sm:$0xff]  ;;  %v75_v25 = vld [vmem:[%s1244_s1 + $0xa8] sm:$0xff] }
   0x7   :  { %732 = vmatpush3.bf16.msra.mxu1 %v731_v13  ;;  %702 = vmatprep.subr.bf16.mxu0 %v701_v17  ;;  %v735_v26 = vpack.c.bf16 %v89_v23, %v88_v21  ;;  %v705_v27 = vpack.c.bf16 %v75_v25, %v74_v24  ;;  %v106_v28 = vld [vmem:[%s1244_s1 + $0x1a0] sm:$0xff]  ;;  %v107_v29 = vld [vmem:[%s1244_s1 + $0x1a8] sm:$0xff]  ;;  %v76_v36 = vld [vmem:[%s1244_s1 + $0xb0] sm:$0xff] }
   0x8   :  { %734 = vmatprep.subr.bf16.mxu1 %v733_v18  ;;  %v58_v30 = vld [vmem:[%s1244_s1 + $0x20] sm:$0xff]  ;;  %v737_v31 = vpack.c.bf16 %v107_v29, %v106_v28  ;;  %v59_v32 = vld [vmem:[%s1244_s1 + $0x28] sm:$0xff]  ;;  %v77_v37 = vld [vmem:[%s1244_s1 + $0xb8] sm:$0xff] }
   0x9   :  { %v90_v33 = vld [vmem:[%s1244_s1 + $0x120] sm:$0xff]  ;;  %v91_v34 = vld [vmem:[%s1244_s1 + $0x128] sm:$0xff]  ;;  %v707_v35 = vpack.c.bf16 %v59_v32, %v58_v30  ;;  %v108_v38 = vld [vmem:[%s1244_s1 + $0x1b0] sm:$0xff]  ;;  %v709_v40 = vpack.c.bf16 %v77_v37, %v76_v36 }
   0xa   :  { %704 = vmatpush3.bf16.msra.mxu0 %v703_v22  ;;  %v739_v39 = vpack.c.bf16 %v91_v34, %v90_v33  ;;  %v109_v41 = vld [vmem:[%s1244_s1 + $0x1b8] sm:$0xff]  ;;  %v60_v42 = vld [vmem:[%s1244_s1 + $0x30] sm:$0xff]  ;;  %v78_v47 = vld [vmem:[%s1244_s1 + $0xc0] sm:$0xff] }
   0xb   :  { %736 = vmatpush3.bf16.msra.mxu1 %v735_v26  ;;  %706 = vmatprep.subr.bf16.mxu0 %v705_v27  ;;  %v61_v43 = vld [vmem:[%s1244_s1 + $0x38] sm:$0xff]  ;;  %v741_v44 = vpack.c.bf16 %v109_v41, %v108_v38  ;;  %v92_v45 = vld [vmem:[%s1244_s1 + $0x130] sm:$0xff]  ;;  %v79_v48 = vld [vmem:[%s1244_s1 + $0xc8] sm:$0xff] }
   0xc   :  { %738 = vmatprep.subr.bf16.mxu1 %v737_v31  ;;  %v93_v46 = vld [vmem:[%s1244_s1 + $0x138] sm:$0xff]  ;;  %v110_v49 = vld [vmem:[%s1244_s1 + $0x1c0] sm:$0xff]  ;;  %v111_v50 = vld [vmem:[%s1244_s1 + $0x1c8] sm:$0xff]  ;;  %v711_v51 = vpack.c.bf16 %v61_v43, %v60_v42  ;;  %v713_v53 = vpack.c.bf16 %v79_v48, %v78_v47 }
   0xd   :  { %v743_v52 = vpack.c.bf16 %v93_v46, %v92_v45  ;;  %v62_v54 = vld [vmem:[%s1244_s1 + $0x40] sm:$0xff]  ;;  %v63_v55 = vld [vmem:[%s1244_s1 + $0x48] sm:$0xff]  ;;  %v745_v57 = vpack.c.bf16 %v111_v50, %v110_v49  ;;  %v80_v59 = vld [vmem:[%s1244_s1 + $0xd0] sm:$0xff] }
   0xe   :  { %708 = vmatpush3.bf16.msra.mxu0 %v707_v35  ;;  %v94_v56 = vld [vmem:[%s1244_s1 + $0x140] sm:$0xff]  ;;  %v95_v58 = vld [vmem:[%s1244_s1 + $0x148] sm:$0xff]  ;;  %v81_v60 = vld [vmem:[%s1244_s1 + $0xd8] sm:$0xff]  ;;  %v715_v63 = vpack.c.bf16 %v63_v55, %v62_v54 }
   0xf   :  { %740 = vmatpush3.bf16.msra.mxu1 %v739_v39  ;;  %710 = vmatprep.subr.bf16.mxu0 %v709_v40  ;;  %v112_v61 = vld [vmem:[%s1244_s1 + $0x1d0] sm:$0xff]  ;;  %v113_v62 = vld [vmem:[%s1244_s1 + $0x1d8] sm:$0xff]  ;;  %v747_v0 = vpack.c.bf16 %v95_v58, %v94_v56  ;;  %v717_v1 = vpack.c.bf16 %v81_v60, %v80_v59  ;;  %v82_v7 = vld [vmem:[%s1244_s1 + $0xe0] sm:$0xff] }
  0x10   :  { %742 = vmatprep.subr.bf16.mxu1 %v741_v44  ;;  %v64_v2 = vld [vmem:[%s1244_s1 + $0x50] sm:$0xff]  ;;  %v65_v3 = vld [vmem:[%s1244_s1 + $0x58] sm:$0xff]  ;;  %v749_v5 = vpack.c.bf16 %v113_v62, %v112_v61  ;;  %v83_v8 = vld [vmem:[%s1244_s1 + $0xe8] sm:$0xff] }
  0x11   :  { %v96_v4 = vld [vmem:[%s1244_s1 + $0x150] sm:$0xff]  ;;  %v97_v6 = vld [vmem:[%s1244_s1 + $0x158] sm:$0xff]  ;;  %v114_v9 = vld [vmem:[%s1244_s1 + $0x1e0] sm:$0xff]  ;;  %v719_v11 = vpack.c.bf16 %v65_v3, %v64_v2  ;;  %v721_v15 = vpack.c.bf16 %v83_v8, %v82_v7 }
  0x12   :  { %712 = vmatpush3.bf16.msra.mxu0 %v711_v51  ;;  %v115_v10 = vld [vmem:[%s1244_s1 + $0x1e8] sm:$0xff]  ;;  %v66_v12 = vld [vmem:[%s1244_s1 + $0x60] sm:$0xff]  ;;  %v751_v14 = vpack.c.bf16 %v97_v6, %v96_v4  ;;  %v17_v18 = vld [vmem:[%s1245_s0 + $0x18] sm:$0xff] }
  0x13   :  { %744 = vmatpush3.bf16.msra.mxu1 %v743_v52  ;;  %714 = vmatprep.subr.bf16.mxu0 %v713_v53  ;;  %v67_v13 = vld [vmem:[%s1244_s1 + $0x68] sm:$0xff]  ;;  %v98_v16 = vld [vmem:[%s1244_s1 + $0x160] sm:$0xff]  ;;  %v753_v19 = vpack.c.bf16 %v115_v10, %v114_v9  ;;  %v84_v21 = vld [vmem:[%s1244_s1 + $0xf0] sm:$0xff] }
  0x14   :  { %746 = vmatprep.subr.bf16.mxu1 %v745_v57  ;;  %v15_v17 = vld [vmem:[%s1245_s0 + $0x8] sm:$0xff]  ;;  %v85_v22 = vld [vmem:[%s1244_s1 + $0xf8] sm:$0xff]  ;;  %v116_v23 = vld [vmem:[%s1244_s1 + $0x1f0] sm:$0xff]  ;;  %351 = vmatprep.mubr.f32.mxu1 %v17_v18  ;;  %v723_v25 = vpack.c.bf16 %v67_v13, %v66_v12 }
  0x15   :  { %v99_v20 = vld [vmem:[%s1244_s1 + $0x168] sm:$0xff]  ;;  %246 = vmatprep.mubr.f32.mxu0 %v15_v17  ;;  %v117_v24 = vld [vmem:[%s1244_s1 + $0x1f8] sm:$0xff]  ;;  %v725_v27 = vpack.c.bf16 %v85_v22, %v84_v21  ;;  %v68_v28 = vld [vmem:[%s1244_s1 + $0x70] sm:$0xff] }
  0x16   :  { %716 = vmatpush3.bf16.msra.mxu0 %v715_v63  ;;  %v755_v26 = vpack.c.bf16 %v99_v20, %v98_v16  ;;  %v69_v29 = vld [vmem:[%s1244_s1 + $0x78] sm:$0xff]  ;;  %v100_v30 = vld [vmem:[%s1244_s1 + $0x170] sm:$0xff]  ;;  %v757_v31 = vpack.c.bf16 %v117_v24, %v116_v23  ;;  %v118_v33 = vld [vmem:[%s1244_s1 + $0x200] sm:$0xff] }
  0x17   :  { %748 = vmatpush3.bf16.msra.mxu1 %v747_v0  ;;  %718 = vmatprep.subr.bf16.mxu0 %v717_v1  ;;  %v101_v32 = vld [vmem:[%s1244_s1 + $0x178] sm:$0xff]  ;;  %v119_v34 = vld [vmem:[%s1244_s1 + $0x208] sm:$0xff]  ;;  %v727_v35 = vpack.c.bf16 %v69_v29, %v68_v28  ;;  %v120_v38 = vld [vmem:[%s1244_s1 + $0x210] sm:$0xff] }
  0x18   :  { %750 = vmatprep.subr.bf16.mxu1 %v749_v5  ;;  %v759_v36 = vpack.c.bf16 %v101_v32, %v100_v30  ;;  %v761_v37 = vpack.c.bf16 %v119_v34, %v118_v33  ;;  %v121_v39 = vld [vmem:[%s1244_s1 + $0x218] sm:$0xff]  ;;  %v14_v40 = vld [vmem:[%s1245_s0] sm:$0xff]  ;;  %v16_v41 = vld [vmem:[%s1245_s0 + $0x10] sm:$0xff] }
  0x19   :  { %v20_v42 = vld [vmem:[%s1245_s0 + $0x30] sm:$0xff]  ;;  %v765_v43 = vpack.c.bf16 %v121_v39, %v120_v38  ;;  %v22_v44 = vld [vmem:[%s1245_s0 + $0x40] sm:$0xff]  ;;  %v123_v46 = vld [vmem:[%s1244_s1 + $0x228] sm:$0xff] }
  0x1a   :  { %720 = vmatpush3.bf16.msra.mxu0 %v719_v11  ;;  %v122_v45 = vld [vmem:[%s1244_s1 + $0x220] sm:$0xff]  ;;  %v19_v47 = vld [vmem:[%s1245_s0 + $0x28] sm:$0xff]  ;;  %v21_v48 = vld [vmem:[%s1245_s0 + $0x38] sm:$0xff] }
  0x1b   :  { %752 = vmatpush3.bf16.msra.mxu1 %v751_v14  ;;  %722 = vmatprep.subr.bf16.mxu0 %v721_v15  ;;  %v25_v49 = vld [vmem:[%s1245_s0 + $0x58] sm:$0xff]  ;;  %v769_v50 = vpack.c.bf16 %v123_v46, %v122_v45  ;;  %v27_v51 = vld [vmem:[%s1245_s0 + $0x68] sm:$0xff]  ;;  %v124_v52 = vld [vmem:[%s1244_s1 + $0x230] sm:$0xff] }
  0x1c   :  { %754 = vmatprep.subr.bf16.mxu1 %v753_v19  ;;  %v125_v53 = vld [vmem:[%s1244_s1 + $0x238] sm:$0xff]  ;;  %v24_v54 = vld [vmem:[%s1245_s0 + $0x50] sm:$0xff]  ;;  %v26_v55 = vld [vmem:[%s1245_s0 + $0x60] sm:$0xff] }
  0x1d   :  { %v30_v56 = vld [vmem:[%s1245_s0 + $0x80] sm:$0xff]  ;;  %v773_v57 = vpack.c.bf16 %v125_v53, %v124_v52  ;;  %v32_v58 = vld [vmem:[%s1245_s0 + $0x90] sm:$0xff]  ;;  %v127_v60 = vld [vmem:[%s1244_s1 + $0x248] sm:$0xff] }
  0x1e   :  { %724 = vmatpush3.bf16.msra.mxu0 %v723_v25  ;;  %v126_v59 = vld [vmem:[%s1244_s1 + $0x240] sm:$0xff]  ;;  %v29_v61 = vld [vmem:[%s1245_s0 + $0x78] sm:$0xff]  ;;  %v31_v62 = vld [vmem:[%s1245_s0 + $0x88] sm:$0xff] }
  0x1f   :  { %756 = vmatpush3.bf16.msra.mxu1 %v755_v26  ;;  %726 = vmatprep.subr.bf16.mxu0 %v725_v27  ;;  %v35_v63 = vld [vmem:[%s1245_s0 + $0xa8] sm:$0xff]  ;;  %v777_v0 = vpack.c.bf16 %v127_v60, %v126_v59  ;;  %v37_v1 = vld [vmem:[%s1245_s0 + $0xb8] sm:$0xff]  ;;  %v128_v2 = vld [vmem:[%s1244_s1 + $0x250] sm:$0xff] }
  0x20   :  { %758 = vmatprep.subr.bf16.mxu1 %v757_v31  ;;  %v129_v3 = vld [vmem:[%s1244_s1 + $0x258] sm:$0xff]  ;;  %v34_v4 = vld [vmem:[%s1245_s0 + $0xa0] sm:$0xff]  ;;  %v36_v5 = vld [vmem:[%s1245_s0 + $0xb0] sm:$0xff] }
  0x21   :  { %v40_v6 = vld [vmem:[%s1245_s0 + $0xd0] sm:$0xff]  ;;  %v781_v7 = vpack.c.bf16 %v129_v3, %v128_v2  ;;  %v42_v8 = vld [vmem:[%s1245_s0 + $0xe0] sm:$0xff]  ;;  %v131_v10 = vld [vmem:[%s1244_s1 + $0x268] sm:$0xff] }
  0x22   :  { %728 = vmatpush3.bf16.msra.mxu0 %v727_v35  ;;  %v130_v9 = vld [vmem:[%s1244_s1 + $0x260] sm:$0xff]  ;;  %v39_v11 = vld [vmem:[%s1245_s0 + $0xc8] sm:$0xff]  ;;  %v41_v12 = vld [vmem:[%s1245_s0 + $0xd8] sm:$0xff] }
  0x23   :  { %760 = vmatpush3.bf16.msra.mxu1 %v759_v36  ;;  %762 = vmatprep.subr.bf16.mxu0 %v761_v37  ;;  %v45_v13 = vld [vmem:[%s1245_s0 + $0xf8] sm:$0xff]  ;;  %v785_v14 = vpack.c.bf16 %v131_v10, %v130_v9  ;;  %v47_v15 = vld [vmem:[%s1245_s0 + $0x108] sm:$0xff]  ;;  %v132_v16 = vld [vmem:[%s1244_s1 + $0x270] sm:$0xff] }
  0x24   :  { %793 = vmatprep.subr.bf16.mxu1 %v761_v37  ;;  %v133_v17 = vld [vmem:[%s1244_s1 + $0x278] sm:$0xff]  ;;  %v44_v18 = vld [vmem:[%s1245_s0 + $0xf0] sm:$0xff]  ;;  %v46_v19 = vld [vmem:[%s1245_s0 + $0x100] sm:$0xff] }
  0x25   :  { %247 = vmatmul.mubr.f32.vlgmr.msra.gmra.mrb[0].mxu0 %v14_v40  ;;  %v50_v20 = vld [vmem:[%s1245_s0 + $0x120] sm:$0xff]  ;;  %v789_v21 = vpack.c.bf16 %v133_v17, %v132_v16  ;;  %v52_v22 = vld [vmem:[%s1245_s0 + $0x130] sm:$0xff]  ;;  %v49_v23 = vld [vmem:[%s1245_s0 + $0x118] sm:$0xff] }
  0x26   :  { %352 = vmatmul.mubr.f32.vlgmr.msra.gmra.mrb[0].mxu1 %v16_v41  ;;  %764 = vmatpush3.bf16.msra.mxu0 %v761_v37  ;;  %v51_v24 = vld [vmem:[%s1245_s0 + $0x128] sm:$0xff]  ;;  %v18_v25 = vld [vmem:[%s1245_s0 + $0x20] sm:$0xff]  ;;  %v136_v29 = vld [vmem:[%s1246_s2 + $0x10] sm:$0xff] }
  0x27   :  { %801 = vmatpush3.bf16.msra.mxu1 %v761_v37  ;;  %251 = vmatprep.mubr.f32.mxu0 %v20_v42  ;;  %v38_v26 = vld [vmem:[%s1245_s0 + $0xc0] sm:$0xff]  ;;  %v23_v28 = vld [vmem:[%s1245_s0 + $0x48] sm:$0xff]  ;;  %v28_v31 = vld [vmem:[%s1245_s0 + $0x70] sm:$0xff] }
  0x28   :  { %356 = vmatprep.mubr.f32.mxu1 %v22_v44  ;;  %766 = vmatprep.subr.bf16.mxu0 %v765_v43  ;;  %v134_v27 = vld [vmem:[%s1246_s2] sm:$0xff]  ;;  %v43_v30 = vld [vmem:[%s1245_s0 + $0xe8] sm:$0xff]  ;;  %v48_v32 = vld [vmem:[%s1245_s0 + $0x110] sm:$0xff] }
  0x29   :  { %252 = vmatmul.mubr.f32.gmra.mrb[2].mxu0 %v19_v47  ;;  %794 = vmatprep.subr.bf16.mxu1 %v765_v43  ;;  %v135_v33 = vld [vmem:[%s1246_s2 + $0x8] sm:$0xff]  ;;  %v33_v34 = vld [vmem:[%s1245_s0 + $0x98] sm:$0xff]  ;;  %v138_v37 = vld [vmem:[%s1246_s2 + $0x20] sm:$0xff] }
  0x2a   :  { %357 = vmatmul.mubr.f32.gmra.mrb[2].mxu1 %v21_v48  ;;  %768 = vmatpush3.bf16.msra.mxu0 %v765_v43  ;;  %v137_v35 = vld [vmem:[%s1246_s2 + $0x18] sm:$0xff]  ;;  %v139_v38 = vld [vmem:[%s1246_s2 + $0x28] sm:$0xff]  ;;  %v140_v39 = vld [vmem:[%s1246_s2 + $0x30] sm:$0xff] }
  0x2b   :  { %802 = vmatpush3.bf16.msra.mxu1 %v765_v43  ;;  %256 = vmatprep.mubr.f32.mxu0 %v25_v49  ;;  %v53_v36 = vld [vmem:[%s1245_s0 + $0x138] sm:$0xff] }
  0x2c   :  { %361 = vmatprep.mubr.f32.mxu1 %v27_v51  ;;  %770 = vmatprep.subr.bf16.mxu0 %v769_v50  ;;  %v141_v40 = vld [vmem:[%s1246_s2 + $0x38] sm:$0xff] }
  0x2d   :  { %257 = vmatmul.mubr.f32.gmra.mrb[4].mxu0 %v24_v54  ;;  %795 = vmatprep.subr.bf16.mxu1 %v769_v50 }
  0x2e   :  { %362 = vmatmul.mubr.f32.gmra.mrb[4].mxu1 %v26_v55  ;;  %772 = vmatpush3.bf16.msra.mxu0 %v769_v50 }
  0x2f   :  { %803 = vmatpush3.bf16.msra.mxu1 %v769_v50  ;;  %261 = vmatprep.mubr.f32.mxu0 %v30_v56 }
  0x30   :  { %366 = vmatprep.mubr.f32.mxu1 %v32_v58  ;;  %774 = vmatprep.subr.bf16.mxu0 %v773_v57 }
  0x31   :  { %262 = vmatmul.mubr.f32.gmra.mrb[6].mxu0 %v29_v61  ;;  %796 = vmatprep.subr.bf16.mxu1 %v773_v57 }
  0x32   :  { %367 = vmatmul.mubr.f32.gmra.mrb[6].mxu1 %v31_v62  ;;  %776 = vmatpush3.bf16.msra.mxu0 %v773_v57 }
  0x33   :  { %804 = vmatpush3.bf16.msra.mxu1 %v773_v57  ;;  %266 = vmatprep.mubr.f32.mxu0 %v35_v63 }
  0x34   :  { %371 = vmatprep.mubr.f32.mxu1 %v37_v1  ;;  %778 = vmatprep.subr.bf16.mxu0 %v777_v0 }
  0x35   :  { %267 = vmatmul.mubr.f32.gmra.mrb[8].mxu0 %v34_v4  ;;  %797 = vmatprep.subr.bf16.mxu1 %v777_v0 }
  0x36   :  { %372 = vmatmul.mubr.f32.gmra.mrb[8].mxu1 %v36_v5  ;;  %780 = vmatpush3.bf16.msra.mxu0 %v777_v0 }
  0x37   :  { %805 = vmatpush3.bf16.msra.mxu1 %v777_v0  ;;  %271 = vmatprep.mubr.f32.mxu0 %v40_v6 }
  0x38   :  { %376 = vmatprep.mubr.f32.mxu1 %v42_v8  ;;  %782 = vmatprep.subr.bf16.mxu0 %v781_v7 }
  0x39   :  { %272 = vmatmul.mubr.f32.gmra.mrb[10].mxu0 %v39_v11  ;;  %798 = vmatprep.subr.bf16.mxu1 %v781_v7 }
  0x3a   :  { %377 = vmatmul.mubr.f32.gmra.mrb[10].mxu1 %v41_v12  ;;  %784 = vmatpush3.bf16.msra.mxu0 %v781_v7 }
  0x3b   :  { %806 = vmatpush3.bf16.msra.mxu1 %v781_v7  ;;  %276 = vmatprep.mubr.f32.mxu0 %v45_v13 }
  0x3c   :  { %381 = vmatprep.mubr.f32.mxu1 %v47_v15  ;;  %786 = vmatprep.subr.bf16.mxu0 %v785_v14 }
  0x3d   :  { %277 = vmatmul.mubr.f32.gmra.mrb[12].mxu0 %v44_v18  ;;  %799 = vmatprep.subr.bf16.mxu1 %v785_v14 }
  0x3e   :  { %382 = vmatmul.mubr.f32.gmra.mrb[12].mxu1 %v46_v19  ;;  %788 = vmatpush3.bf16.msra.mxu0 %v785_v14 }
  0x3f   :  { %807 = vmatpush3.bf16.msra.mxu1 %v785_v14  ;;  %281 = vmatprep.mubr.f32.mxu0 %v50_v20 }
  0x40   :  { %386 = vmatprep.mubr.f32.mxu1 %v52_v22  ;;  %790 = vmatprep.subr.bf16.mxu0 %v789_v21 }
  0x41   :  { %282 = vmatmul.mubr.f32.gmra.mrb[14].mxu0 %v49_v23  ;;  %800 = vmatprep.subr.bf16.mxu1 %v789_v21 }
  0x42   :  { %387 = vmatmul.mubr.f32.gmra.mrb[14].mxu1 %v51_v24  ;;  %792 = vmatpush3.bf16.msra.mxu0 %v789_v21 }
  0x43   :  { %808 = vmatpush3.bf16.msra.mxu1 %v789_v21  ;;  %685 = vmatprep.mubr.f32.mxu0 %v18_v25 }
  0x44   :  { %691 = vmatprep.mubr.f32.mxu1 %v38_v26  ;;  %144 = vperm.xlu0 %810, %v134_v27  }
  0x45   :  { %686 = vmatmul.mubr.f32.vlgmr.msra.gmra.mrb[16].mxu0 %v23_v28  ;;  %154 = vperm.xlu1 %811, %v136_v29  }
  0x46   :  { %692 = vmatmul.mubr.f32.vlgmr.msra.gmra.mrb[16].mxu1 %v43_v30  ;;  %688 = vmatprep.mubr.f32.mxu0 %v28_v31 }
  0x47   :  { %694 = vmatprep.mubr.f32.mxu1 %v48_v32 }
  0x48   :  { %149 = vperm.xlu0 %810, %v135_v33  }
  0x49   :  { %689 = vmatmul.mubr.f32.gmra.mrb[18].mxu0 %v33_v34  ;;  %159 = vperm.xlu1 %811, %v137_v35  }
  0x4a   :  { %695 = vmatmul.mubr.f32.gmra.mrb[18].mxu1 %v53_v36 }
  0x4c   :  { %164 = vperm.xlu0 %810, %v138_v37  }
  0x4d   :  { %169 = vperm.xlu1 %811, %v139_v38  }
  0x50   :  { %174 = vperm.xlu0 %810, %v140_v39  }
  0x51   :  { %179 = vperm.xlu1 %811, %v141_v40  }
  0xc3   :  { %v145_v41 = vpop.permute.xlu0 %144 }
  0xc4   :  { %v155_v59 = vpop.permute.xlu1 %154 }
  0xc7   :  { %v150_v50 = vpop.permute.xlu0 %149 }
  0xc8   :  { %v160_v10 = vpop.permute.xlu1 %159 }
  0xcb   :  { %v165_v19 = vpop.permute.xlu0 %164 }
  0xcc   :  { %v170_v27 = vpop.permute.xlu1 %169 }
  0xcf   :  { %v175_v36 = vpop.permute.xlu0 %174 }
  0xf8   :  { %v549_v42 = vpop.f32.mrb[0].mxu0 }
  0xf9   :  { %v605_v43 = vpop.f32.mrb[0].mxu1  ;;  %v550_v44 = vpop.f32.mrb[1].mxu0 }
  0xfa   :  { %v551_v45 = vadd.f32 %v550_v44, %v549_v42  ;;  %v606_v46 = vpop.f32.mrb[1].mxu1 }
  0xfb   :  { %v607_v47 = vadd.f32 %v606_v46, %v605_v43 }
  0xfc   :  { %v249_v48 = vadd.f32 %v551_v45, %v145_v41  ;;  %v552_v49 = vpop.f32.mrb[2].mxu0  ;;  %v180_v45 = vpop.permute.xlu1 %179 }
  0xfd   :  { %v608_v51 = vpop.f32.mrb[2].mxu1  ;;  %v553_v52 = vpop.f32.mrb[3].mxu0 }
  0xfe   :  { %v554_v53 = vadd.f32 %v553_v52, %v552_v49  ;;  %v609_v54 = vpop.f32.mrb[3].mxu1  ;;  %v1217_v55 = vadd.f32 %v607_v47, %v249_v48 }
  0xff   :  { %v610_v56 = vadd.f32 %v609_v54, %v608_v51 }
 0x100   :  { %v254_v57 = vadd.f32 %v554_v53, %v150_v50  ;;  %v555_v58 = vpop.f32.mrb[4].mxu0 }
 0x101   :  { %v611_v60 = vpop.f32.mrb[4].mxu1  ;;  %v556_v61 = vpop.f32.mrb[5].mxu0 }
 0x102   :  { %v557_v62 = vadd.f32 %v556_v61, %v555_v58  ;;  %v612_v63 = vpop.f32.mrb[5].mxu1  ;;  %v359_v0 = vadd.f32 %v610_v56, %v254_v57 }
 0x103   :  { %v613_v1 = vadd.f32 %v612_v63, %v611_v60 }
 0x104   :  { %v259_v2 = vadd.f32 %v557_v62, %v155_v59  ;;  %v558_v3 = vpop.f32.mrb[6].mxu0 }
 0x105   :  { %v614_v4 = vpop.f32.mrb[6].mxu1  ;;  %v559_v5 = vpop.f32.mrb[7].mxu0 }
 0x106   :  { %v560_v6 = vadd.f32 %v559_v5, %v558_v3  ;;  %v615_v7 = vpop.f32.mrb[7].mxu1  ;;  %v364_v8 = vadd.f32 %v613_v1, %v259_v2 }
 0x107   :  { %v616_v9 = vadd.f32 %v615_v7, %v614_v4 }
 0x108   :  { %v264_v11 = vadd.f32 %v560_v6, %v160_v10  ;;  %v561_v12 = vpop.f32.mrb[8].mxu0 }
 0x109   :  { %v617_v13 = vpop.f32.mrb[8].mxu1  ;;  %v562_v14 = vpop.f32.mrb[9].mxu0 }
 0x10a   :  { %v563_v15 = vadd.f32 %v562_v14, %v561_v12  ;;  %v618_v16 = vpop.f32.mrb[9].mxu1  ;;  %v369_v17 = vadd.f32 %v616_v9, %v264_v11 }
 0x10b   :  { %v619_v18 = vadd.f32 %v618_v16, %v617_v13 }
 0x10c   :  { %v269_v20 = vadd.f32 %v563_v15, %v165_v19  ;;  %v564_v21 = vpop.f32.mrb[10].mxu0 }
 0x10d   :  { %v620_v22 = vpop.f32.mrb[10].mxu1  ;;  %v565_v23 = vpop.f32.mrb[11].mxu0 }
 0x10e   :  { %v566_v24 = vadd.f32 %v565_v23, %v564_v21  ;;  %v621_v25 = vpop.f32.mrb[11].mxu1  ;;  %v374_v26 = vadd.f32 %v619_v18, %v269_v20 }
 0x10f   :  { %v622_v28 = vadd.f32 %v621_v25, %v620_v22 }
 0x110   :  { %v274_v29 = vadd.f32 %v566_v24, %v170_v27  ;;  %v567_v30 = vpop.f32.mrb[12].mxu0 }
 0x111   :  { %v623_v31 = vpop.f32.mrb[12].mxu1  ;;  %v568_v32 = vpop.f32.mrb[13].mxu0 }
 0x112   :  { %v569_v33 = vadd.f32 %v568_v32, %v567_v30  ;;  %v624_v34 = vpop.f32.mrb[13].mxu1  ;;  %v379_v35 = vadd.f32 %v622_v28, %v274_v29 }
 0x113   :  { %v625_v37 = vadd.f32 %v624_v34, %v623_v31 }
 0x114   :  { %v279_v38 = vadd.f32 %v569_v33, %v175_v36  ;;  %v570_v39 = vpop.f32.mrb[14].mxu0 }
 0x115   :  { %v626_v40 = vpop.f32.mrb[14].mxu1  ;;  %v571_v41 = vpop.f32.mrb[15].mxu0 }
 0x116   :  { %v572_v42 = vadd.f32 %v571_v41, %v570_v39  ;;  %v627_v43 = vpop.f32.mrb[15].mxu1  ;;  %v384_v44 = vadd.f32 %v625_v37, %v279_v38 }
 0x117   :  { %v628_v46 = vadd.f32 %v627_v43, %v626_v40 }
 0x118   :  { %v284_v47 = vadd.f32 %v572_v42, %v180_v45  ;;  %v687_v48 = vpop.f32.mrb[16].mxu0 }
 0x119   :  { %v464_v49 = vadd.f32 %v687_v48, %v359_v0  ;;  %v693_v50 = vpop.f32.mrb[16].mxu1  ;;  %v458_v51 = vpop.f32.mrb[17].mxu0 }
 0x11a   :  { %v484_v52 = vadd.f32 %v693_v50, %v379_v35  ;;  %v459_v53 = vadd.f32 %v458_v51, %v1217_v55  ;;  %v478_v54 = vpop.f32.mrb[17].mxu1  ;;  %v389_v56 = vadd.f32 %v628_v46, %v284_v47 }
 0x11b   :  { %v498_v57 = vmax.f32 %v464_v49, 0.0  ;;  %v479_v58 = vadd.f32 %v478_v54, %v374_v26 }
 0x11c   :  { %v502_v59 = vmax.f32 %v484_v52, 0.0  ;;  %v497_v60 = vmax.f32 %v459_v53, 0.0  ;;  %v690_v61 = vpop.f32.mrb[18].mxu0 }
 0x11d   :  { %506 = vst [vmem:[%s1247_s3 + $0x8] sm:$0xff] %v498_v57  ;;  %v501_v62 = vmax.f32 %v479_v58, 0.0  ;;  %v474_v63 = vadd.f32 %v690_v61, %v369_v17  ;;  %v696_v1 = vpop.f32.mrb[18].mxu1  ;;  %v468_v0 = vpop.f32.mrb[19].mxu0 }
 0x11e   :  { %510 = vst [vmem:[%s1247_s3 + $0x28] sm:$0xff] %v502_v59  ;;  %505 = vst [vmem:[%s1247_s3] sm:$0xff] %v497_v60  ;;  %v494_v55 = vadd.f32 %v696_v1, %v389_v56  ;;  %v469_v2 = vadd.f32 %v468_v0, %v364_v8  ;;  %v488_v3 = vpop.f32.mrb[19].mxu1 }
 0x11f   :  { %509 = vst [vmem:[%s1247_s3 + $0x20] sm:$0xff] %v501_v62  ;;  %v500_v4 = vmax.f32 %v474_v63, 0.0  ;;  %v489_v5 = vadd.f32 %v488_v3, %v384_v44 }
 0x120   :  { %v504_v6 = vmax.f32 %v494_v55, 0.0  ;;  %v499_v7 = vmax.f32 %v469_v2, 0.0 }
 0x121   :  { %508 = vst [vmem:[%s1247_s3 + $0x18] sm:$0xff] %v500_v4  ;;  %v503_v9 = vmax.f32 %v489_v5, 0.0 }
 0x122   :  { %512 = vst [vmem:[%s1247_s3 + $0x38] sm:$0xff] %v504_v6  ;;  %507 = vst [vmem:[%s1247_s3 + $0x10] sm:$0xff] %v499_v7 }
 0x123   :  { %511 = vst [vmem:[%s1247_s3 + $0x30] sm:$0xff] %v503_v9 }

</bundles_post_ra>
